<compile_context>
chip_gen: v7x
topology: tpu7x:2x2x1
jax: 0.10.0
libtpu: 0.0.40
codegen_flags: <defaults>
</compile_context>

<pallas_src>
import functools

import jax
import jax.numpy as jnp
from jax.experimental import pallas as pl
from jax.experimental.pallas import tpu as pltpu

# Explicit VMEM limit: v5e's default scoped limit is only 16 MiB; 32 MiB is
# safe on v5e/v6e (128 MiB physical) and v7x (64 MiB physical).
_VMEM_LIMIT = 32 * 1024 * 1024


def _query_attention_kernel(scale, num_heads, head_dim,
                            q_ref, x_ref, wq_ref, bq_ref, wkv_ref, bkv_ref,
                            wp_ref, bp_ref, out_ref, attn_ref,
                            qrows_ref, merged_ref):
    """One grid step == one batch element; all heads and all 3 linears fused."""
    C = num_heads * head_dim
    nc = q_ref.shape[1]

    # ---- fc_q : q_lin = q @ Wq^T + bq, then scale once (tiny (nc, C) tile) --
    # attn1 = (q @ k^T) * scale  ==  (q * scale) @ k^T
    q_lin = jax.lax.dot_general(
        q_ref[0], wq_ref[...], (((1,), (1,)), ((), ())),
        preferred_element_type=jnp.float32) + bq_ref[...]
    q_sc = q_lin * scale

    # PyTorch head split is the row-major reshape (nc, C) -> (H, nc, hd)
    # (NOT a per-row column split).  Relabel into (H*nc, hd) rows through a
    # tiny VMEM scratch with static sub-tile copies; per-head query tiles are
    # then contiguous sublane row-slices.
    for r in range(num_heads * nc):
        ro, co = r // num_heads, (r % num_heads) * head_dim
        qrows_ref[r:r + 1, :] = q_sc[ro:ro + 1, co:co + head_dim]

    # ---- fc_kv, TRANSPOSED: kv_t = Wkv @ x^T + bkv  -> (2C, N) --------------
    # Computed on the fly: the kv projection never touches HBM.  N is on the
    # lane axis, so K rows [h*hd,(h+1)*hd) and V rows [C+h*hd, ...) per head
    # are contiguous sublane slices.
    kv_t = jax.lax.dot_general(
        wkv_ref[...], x_ref[0], (((1,), (1,)), ((), ())),
        preferred_element_type=jnp.float32) + bkv_ref[...]
    kv_bf = kv_t.astype(jnp.bfloat16)
    # TODO(synk): for much larger token counts N (deeper UNet resolutions),
    # tile the key axis here (two-pass softmax) so the (2C, N) slab stays well
    # inside v7x's 64 MiB VMEM; at N=512 it is only a few hundred KiB.

    # ---- per-head attention (static unroll; num_heads is small) -------------
    for h in range(num_heads):
        q_h = qrows_ref[h * nc:(h + 1) * nc, :].astype(jnp.bfloat16)   # (nc, hd)
        k_t = kv_bf[h * head_dim:(h + 1) * head_dim, :]                # (hd, N)
        v_t = kv_bf[C + h * head_dim:C + (h + 1) * head_dim, :]        # (hd, N)

        # pre-softmax scores; stored per head as a dense (nc, N) slab of the
        # (B, H, nc, N) output (permute to (B, nc, H, N) happens outside on
        # the tiny tensor, keeping these stores lane/sublane-dense).
        s = jnp.dot(q_h, k_t, preferred_element_type=jnp.float32)      # (nc, N)
        attn_ref[0, h] = s

        # numerically stable softmax over keys (exact division; attn_drop is
        # identity at p=0.0).
        m = jnp.max(s, axis=-1, keepdims=True)
        e = jnp.exp(s - m)
        p = e / jnp.sum(e, axis=-1, keepdims=True)

        # context (nc, hd): contract over N (lane axis of both operands).
        ctx_h = jax.lax.dot_general(
            p.astype(jnp.bfloat16), v_t, (((1,), (1,)), ((), ())),
            preferred_element_type=jnp.float32)

        # exact PyTorch head merge (B, H, nc, hd).reshape(B, nc, C): a pure
        # row-major relabelling, scattered into the (nc, C) merged scratch
        # with static sub-tile stores.
        for qq in range(nc):
            r = h * nc + qq
            ro, co = r // num_heads, (r % num_heads) * head_dim
            merged_ref[ro:ro + 1, co:co + head_dim] = ctx_h[qq:qq + 1, :]

    # ---- proj : out = merged @ Wp^T + bp   (proj_drop is identity) ----------
    out = jax.lax.dot_general(
        merged_ref[...].astype(jnp.bfloat16), wp_ref[...],
        (((1,), (1,)), ((), ())), preferred_element_type=jnp.float32)
    out_ref[0] = out + bp_ref[...]


def query_attention_forward(q, x, params, num_heads):
    """q: (B, num_classes, C), x: (B, N, C).  Returns (out, attn) like PyTorch."""
    B, N, C = x.shape
    nc = q.shape[1]
    head_dim = C // num_heads
    scale = head_dim ** (-0.5)
    f32, bf16 = jnp.float32, jnp.bfloat16

    # MXU operands in bf16 (cast once here, not per grid step inside the kernel);
    # biases stay f32 and are added to the f32 accumulators.
    wq = params["w_q"].astype(bf16)
    wkv = params["w_kv"].astype(bf16)
    wp = params["w_proj"].astype(bf16)
    b_q, b_kv = params.get("b_q"), params.get("b_kv")
    bq = (jnp.zeros((C,), f32) if b_q is None else jnp.asarray(b_q, f32)).reshape(1, C)
    bkv = (jnp.zeros((2 * C,), f32) if b_kv is None
           else jnp.asarray(b_kv, f32)).reshape(2 * C, 1)
    bp = jnp.asarray(params["b_proj"], f32).reshape(1, C)

    kern = functools.partial(_query_attention_kernel, scale, num_heads, head_dim)

    out, attn_s = pl.pallas_call(
        kern,
        out_shape=(
            jax.ShapeDtypeStruct((B, nc, C), f32),              # proj output
            jax.ShapeDtypeStruct((B, num_heads, nc, N), f32),   # attn1 (pre-permute)
        ),
        grid=(B,),
        in_specs=[
            pl.BlockSpec((1, nc, C), lambda b: (b, 0, 0)),          # q
            pl.BlockSpec((1, N, C), lambda b: (b, 0, 0)),           # x
            pl.BlockSpec((C, C), lambda b: (0, 0)),                 # w_q   (resident)
            pl.BlockSpec((1, C), lambda b: (0, 0)),                 # b_q
            pl.BlockSpec((2 * C, C), lambda b: (0, 0)),             # w_kv  (resident)
            pl.BlockSpec((2 * C, 1), lambda b: (0, 0)),             # b_kv
            pl.BlockSpec((C, C), lambda b: (0, 0)),                 # w_proj (resident)
            pl.BlockSpec((1, C), lambda b: (0, 0)),                 # b_proj
        ],
        out_specs=(
            pl.BlockSpec((1, nc, C), lambda b: (b, 0, 0)),
            pl.BlockSpec((1, num_heads, nc, N), lambda b: (b, 0, 0, 0)),
        ),
        scratch_shapes=[
            pltpu.VMEM((num_heads * nc, head_dim), f32),   # relabelled q rows
            pltpu.VMEM((nc, C), f32),                      # merged-head context
        ],
        compiler_params=pltpu.CompilerParams(
            dimension_semantics=("parallel",),   # B is even -> both v7x TCs busy
            vmem_limit_bytes=_VMEM_LIMIT),
    )(q.astype(bf16), x.astype(bf16), wq, bq, wkv, bkv, wp, bp)

    # attn1.permute(0, 2, 1, 3): tiny tensor, done in XLA so the in-kernel
    # score stores stay dense.
    return out, jnp.transpose(attn_s, (0, 2, 1, 3))


# -----------------------------------------------------------------------------
# Pure-JAX f32 reference (mirrors the PyTorch module; correctness check only).
# -----------------------------------------------------------------------------
def reference_forward(q, x, params, num_heads):
    B, N, C = x.shape
    nc = q.shape[1]
    hd = C // num_heads
    scale = hd ** (-0.5)
    q_lin = q @ params["w_q"].T
    if params.get("b_q") is not None:
        q_lin = q_lin + params["b_q"]
    qh = q_lin.reshape(B, num_heads, nc, hd)
    kv_lin = x @ params["w_kv"].T
    if params.get("b_kv") is not None:
        kv_lin = kv_lin + params["b_kv"]
    kv = kv_lin.reshape(B, N, 2, num_heads, hd).transpose(2, 0, 3, 1, 4)
    k, v = kv[0], kv[1]
    attn1 = jnp.einsum("bhqd,bhkd->bhqk", qh, k) * scale
    attn2 = jax.nn.softmax(attn1, axis=-1)
    xo = jnp.einsum("bhqk,bhkd->bhqd", attn2, v).reshape(B, nc, C)
    xo = xo @ params["w_proj"].T + params["b_proj"]
    return xo, attn1.transpose(0, 2, 1, 3)


if __name__ == "__main__":
    # Small shapes consistent with the module: N = d*h*w tokens of an 8^3 map.
    B, C = 2, 32
    num_heads, num_classes = 4, 4
    d = h = w = 8
    N = d * h * w                      # 512 tokens

    key = jax.random.PRNGKey(0)
    ks = jax.random.split(key, 8)

    q_in = jax.random.normal(ks[0], (B, num_classes, C), jnp.float32)
    x_in = jax.random.normal(ks[1], (B, N, C), jnp.float32)

    params = {
        # Class_Decoder instantiates Query_Attention with qkv_bias=True,
        # so the q/kv bias path is exercised here.
        "w_q":    0.05 * jax.random.normal(ks[2], (C, C), jnp.float32),
        "b_q":    0.05 * jax.random.normal(ks[3], (C,), jnp.float32),
        "w_kv":   0.05 * jax.random.normal(ks[4], (2 * C, C), jnp.float32),
        "b_kv":   0.05 * jax.random.normal(ks[5], (2 * C,), jnp.float32),
        "w_proj": 0.05 * jax.random.normal(ks[6], (C, C), jnp.float32),
        "b_proj": 0.05 * jax.random.normal(ks[7], (C,), jnp.float32),
    }

    fwd = jax.jit(query_attention_forward, static_argnames=("num_heads",))
    out, attn = fwd(q_in, x_in, params, num_heads=num_heads)
    out = jax.block_until_ready(out)
    attn = jax.block_until_ready(attn)

    ref_out, ref_attn = reference_forward(q_in, x_in, params, num_heads)
    assert out.shape == (B, num_classes, C)
    assert attn.shape == (B, num_classes, num_heads, N)
    # bf16 MXU operands with f32 accumulation -> bf16-appropriate tolerance.
    assert jnp.allclose(out, ref_out, rtol=2e-2, atol=2e-2), \
        float(jnp.max(jnp.abs(out - ref_out)))
    assert jnp.allclose(attn, ref_attn, rtol=2e-2, atol=2e-2), \
        float(jnp.max(jnp.abs(attn - ref_attn)))

    print("KERNEL_OK")
</pallas_src>

<mosaic_0001>
module attributes {stable_mosaic.version = 11 : i64} {
  func.func @_query_attention_kernel(%arg0: i32, %arg1: memref<1x4x32xbf16, #tpu.memory_space<vmem>>, %arg2: memref<1x512x32xbf16, #tpu.memory_space<vmem>>, %arg3: memref<32x32xbf16, #tpu.memory_space<vmem>>, %arg4: memref<1x32xf32, #tpu.memory_space<vmem>>, %arg5: memref<64x32xbf16, #tpu.memory_space<vmem>>, %arg6: memref<64x1xf32, #tpu.memory_space<vmem>>, %arg7: memref<32x32xbf16, #tpu.memory_space<vmem>>, %arg8: memref<1x32xf32, #tpu.memory_space<vmem>>, %arg9: memref<1x4x32xf32, #tpu.memory_space<vmem>>, %arg10: memref<1x4x4x512xf32, #tpu.memory_space<vmem>>, %arg11: memref<16x8xf32, #tpu.memory_space<vmem>>, %arg12: memref<4x32xf32, #tpu.memory_space<vmem>>) attributes {dimension_semantics = [#tpu.dimension_semantics<parallel>], iteration_bounds = array<i64: 2>, scalar_prefetch = 0 : i64, scratch_operands = 2 : i64, tpu.core_type = #tpu.core_type<tc>, window_params = [{transform_indices = @transform_0, window_bounds = array<i64: 1, 4, 32>}, {transform_indices = @transform_1, window_bounds = array<i64: 1, 512, 32>}, {pipeline_mode = #tpu.pipeline_mode<synchronous>, transform_indices = @transform_2, window_bounds = array<i64: 32, 32>}, {pipeline_mode = #tpu.pipeline_mode<synchronous>, transform_indices = @transform_3, window_bounds = array<i64: 1, 32>}, {pipeline_mode = #tpu.pipeline_mode<synchronous>, transform_indices = @transform_4, window_bounds = array<i64: 64, 32>}, {pipeline_mode = #tpu.pipeline_mode<synchronous>, transform_indices = @transform_5, window_bounds = array<i64: 64, 1>}, {pipeline_mode = #tpu.pipeline_mode<synchronous>, transform_indices = @transform_6, window_bounds = array<i64: 32, 32>}, {pipeline_mode = #tpu.pipeline_mode<synchronous>, transform_indices = @transform_7, window_bounds = array<i64: 1, 32>}, {transform_indices = @transform_8, window_bounds = array<i64: 1, 4, 32>}, {transform_indices = @transform_9, window_bounds = array<i64: 1, 4, 4, 512>}]} {
    %c0 = arith.constant 0 : index
    %c0_0 = arith.constant 0 : index
    %c0_1 = arith.constant 0 : index
    %0 = vector.load %arg1[%c0, %c0_0, %c0_1] : memref<1x4x32xbf16, #tpu.memory_space<vmem>>, vector<1x4x32xbf16>
    %1 = vector.shape_cast %0 : vector<1x4x32xbf16> to vector<4x32xbf16>
    %c0_2 = arith.constant 0 : index
    %c0_3 = arith.constant 0 : index
    %2 = vector.load %arg3[%c0_2, %c0_3] : memref<32x32xbf16, #tpu.memory_space<vmem>>, vector<32x32xbf16>
    %cst = arith.constant dense<0.000000e+00> : vector<4x32xf32>
    %3 = tpu.matmul %1, %2, %cst {dimension_numbers = #tpu.dot_dimension_numbers<[1], [1], [0], [0], [0, 0, 1, 0], [], []>} : vector<4x32xbf16>, vector<32x32xbf16>, vector<4x32xf32> -> vector<4x32xf32>
    %c0_4 = arith.constant 0 : index
    %c0_5 = arith.constant 0 : index
    %4 = vector.load %arg4[%c0_4, %c0_5] : memref<1x32xf32, #tpu.memory_space<vmem>>, vector<1x32xf32>
    %5 = vector.broadcast %4 : vector<1x32xf32> to vector<4x32xf32>
    %6 = arith.addf %3, %5 : vector<4x32xf32>
    %cst_6 = arith.constant 0.353553385 : f32
    %7 = vector.broadcast %cst_6 : f32 to vector<4x32xf32>
    %8 = arith.mulf %6, %7 : vector<4x32xf32>
    %9 = vector.extract_strided_slice %8 {offsets = [0, 0], sizes = [1, 8], strides = [1, 1]} : vector<4x32xf32> to vector<1x8xf32>
    %c0_7 = arith.constant 0 : index
    %c0_8 = arith.constant 0 : index
    %10 = vector.load %arg11[%c0_7, %c0_8] : memref<16x8xf32, #tpu.memory_space<vmem>>, vector<1x8xf32>
    tpu.vector_store %arg11[%c0_7, %c0_8], %9 {strides = array<i32>} : memref<16x8xf32, #tpu.memory_space<vmem>>, vector<1x8xf32>,
    %11 = vector.extract_strided_slice %8 {offsets = [0, 8], sizes = [1, 8], strides = [1, 1]} : vector<4x32xf32> to vector<1x8xf32>
    %c1 = arith.constant 1 : index
    %c0_9 = arith.constant 0 : index
    %12 = vector.load %arg11[%c1, %c0_9] : memref<16x8xf32, #tpu.memory_space<vmem>>, vector<1x8xf32>
    tpu.vector_store %arg11[%c1, %c0_9], %11 {strides = array<i32>} : memref<16x8xf32, #tpu.memory_space<vmem>>, vector<1x8xf32>,
    %13 = vector.extract_strided_slice %8 {offsets = [0, 16], sizes = [1, 8], strides = [1, 1]} : vector<4x32xf32> to vector<1x8xf32>
    %c2 = arith.constant 2 : index
    %c0_10 = arith.constant 0 : index
    %14 = vector.load %arg11[%c2, %c0_10] : memref<16x8xf32, #tpu.memory_space<vmem>>, vector<1x8xf32>
    tpu.vector_store %arg11[%c2, %c0_10], %13 {strides = array<i32>} : memref<16x8xf32, #tpu.memory_space<vmem>>, vector<1x8xf32>,
    %15 = vector.extract_strided_slice %8 {offsets = [0, 24], sizes = [1, 8], strides = [1, 1]} : vector<4x32xf32> to vector<1x8xf32>
    %c3 = arith.constant 3 : index
    %c0_11 = arith.constant 0 : index
    %16 = vector.load %arg11[%c3, %c0_11] : memref<16x8xf32, #tpu.memory_space<vmem>>, vector<1x8xf32>
    tpu.vector_store %arg11[%c3, %c0_11], %15 {strides = array<i32>} : memref<16x8xf32, #tpu.memory_space<vmem>>, vector<1x8xf32>,
    %17 = vector.extract_strided_slice %8 {offsets = [1, 0], sizes = [1, 8], strides = [1, 1]} : vector<4x32xf32> to vector<1x8xf32>
    %c4 = arith.constant 4 : index
    %c0_12 = arith.constant 0 : index
    %18 = vector.load %arg11[%c4, %c0_12] : memref<16x8xf32, #tpu.memory_space<vmem>>, vector<1x8xf32>
    tpu.vector_store %arg11[%c4, %c0_12], %17 {strides = array<i32>} : memref<16x8xf32, #tpu.memory_space<vmem>>, vector<1x8xf32>,
    %19 = vector.extract_strided_slice %8 {offsets = [1, 8], sizes = [1, 8], strides = [1, 1]} : vector<4x32xf32> to vector<1x8xf32>
    %c5 = arith.constant 5 : index
    %c0_13 = arith.constant 0 : index
    %20 = vector.load %arg11[%c5, %c0_13] : memref<16x8xf32, #tpu.memory_space<vmem>>, vector<1x8xf32>
    tpu.vector_store %arg11[%c5, %c0_13], %19 {strides = array<i32>} : memref<16x8xf32, #tpu.memory_space<vmem>>, vector<1x8xf32>,
    %21 = vector.extract_strided_slice %8 {offsets = [1, 16], sizes = [1, 8], strides = [1, 1]} : vector<4x32xf32> to vector<1x8xf32>
    %c6 = arith.constant 6 : index
    %c0_14 = arith.constant 0 : index
    %22 = vector.load %arg11[%c6, %c0_14] : memref<16x8xf32, #tpu.memory_space<vmem>>, vector<1x8xf32>
    tpu.vector_store %arg11[%c6, %c0_14], %21 {strides = array<i32>} : memref<16x8xf32, #tpu.memory_space<vmem>>, vector<1x8xf32>,
    %23 = vector.extract_strided_slice %8 {offsets = [1, 24], sizes = [1, 8], strides = [1, 1]} : vector<4x32xf32> to vector<1x8xf32>
    %c7 = arith.constant 7 : index
    %c0_15 = arith.constant 0 : index
    %24 = vector.load %arg11[%c7, %c0_15] : memref<16x8xf32, #tpu.memory_space<vmem>>, vector<1x8xf32>
    tpu.vector_store %arg11[%c7, %c0_15], %23 {strides = array<i32>} : memref<16x8xf32, #tpu.memory_space<vmem>>, vector<1x8xf32>,
    %25 = vector.extract_strided_slice %8 {offsets = [2, 0], sizes = [1, 8], strides = [1, 1]} : vector<4x32xf32> to vector<1x8xf32>
    %c8 = arith.constant 8 : index
    %c0_16 = arith.constant 0 : index
    %26 = vector.load %arg11[%c8, %c0_16] : memref<16x8xf32, #tpu.memory_space<vmem>>, vector<1x8xf32>
    tpu.vector_store %arg11[%c8, %c0_16], %25 {strides = array<i32>} : memref<16x8xf32, #tpu.memory_space<vmem>>, vector<1x8xf32>,
    %27 = vector.extract_strided_slice %8 {offsets = [2, 8], sizes = [1, 8], strides = [1, 1]} : vector<4x32xf32> to vector<1x8xf32>
    %c9 = arith.constant 9 : index
    %c0_17 = arith.constant 0 : index
    %28 = vector.load %arg11[%c9, %c0_17] : memref<16x8xf32, #tpu.memory_space<vmem>>, vector<1x8xf32>
    tpu.vector_store %arg11[%c9, %c0_17], %27 {strides = array<i32>} : memref<16x8xf32, #tpu.memory_space<vmem>>, vector<1x8xf32>,
    %29 = vector.extract_strided_slice %8 {offsets = [2, 16], sizes = [1, 8], strides = [1, 1]} : vector<4x32xf32> to vector<1x8xf32>
    %c10 = arith.constant 10 : index
    %c0_18 = arith.constant 0 : index
    %30 = vector.load %arg11[%c10, %c0_18] : memref<16x8xf32, #tpu.memory_space<vmem>>, vector<1x8xf32>
    tpu.vector_store %arg11[%c10, %c0_18], %29 {strides = array<i32>} : memref<16x8xf32, #tpu.memory_space<vmem>>, vector<1x8xf32>,
    %31 = vector.extract_strided_slice %8 {offsets = [2, 24], sizes = [1, 8], strides = [1, 1]} : vector<4x32xf32> to vector<1x8xf32>
    %c11 = arith.constant 11 : index
    %c0_19 = arith.constant 0 : index
    %32 = vector.load %arg11[%c11, %c0_19] : memref<16x8xf32, #tpu.memory_space<vmem>>, vector<1x8xf32>
    tpu.vector_store %arg11[%c11, %c0_19], %31 {strides = array<i32>} : memref<16x8xf32, #tpu.memory_space<vmem>>, vector<1x8xf32>,
    %33 = vector.extract_strided_slice %8 {offsets = [3, 0], sizes = [1, 8], strides = [1, 1]} : vector<4x32xf32> to vector<1x8xf32>
    %c12 = arith.constant 12 : index
    %c0_20 = arith.constant 0 : index
    %34 = vector.load %arg11[%c12, %c0_20] : memref<16x8xf32, #tpu.memory_space<vmem>>, vector<1x8xf32>
    tpu.vector_store %arg11[%c12, %c0_20], %33 {strides = array<i32>} : memref<16x8xf32, #tpu.memory_space<vmem>>, vector<1x8xf32>,
    %35 = vector.extract_strided_slice %8 {offsets = [3, 8], sizes = [1, 8], strides = [1, 1]} : vector<4x32xf32> to vector<1x8xf32>
    %c13 = arith.constant 13 : index
    %c0_21 = arith.constant 0 : index
    %36 = vector.load %arg11[%c13, %c0_21] : memref<16x8xf32, #tpu.memory_space<vmem>>, vector<1x8xf32>
    tpu.vector_store %arg11[%c13, %c0_21], %35 {strides = array<i32>} : memref<16x8xf32, #tpu.memory_space<vmem>>, vector<1x8xf32>,
    %37 = vector.extract_strided_slice %8 {offsets = [3, 16], sizes = [1, 8], strides = [1, 1]} : vector<4x32xf32> to vector<1x8xf32>
    %c14 = arith.constant 14 : index
    %c0_22 = arith.constant 0 : index
    %38 = vector.load %arg11[%c14, %c0_22] : memref<16x8xf32, #tpu.memory_space<vmem>>, vector<1x8xf32>
    tpu.vector_store %arg11[%c14, %c0_22], %37 {strides = array<i32>} : memref<16x8xf32, #tpu.memory_space<vmem>>, vector<1x8xf32>,
    %39 = vector.extract_strided_slice %8 {offsets = [3, 24], sizes = [1, 8], strides = [1, 1]} : vector<4x32xf32> to vector<1x8xf32>
    %c15 = arith.constant 15 : index
    %c0_23 = arith.constant 0 : index
    %40 = vector.load %arg11[%c15, %c0_23] : memref<16x8xf32, #tpu.memory_space<vmem>>, vector<1x8xf32>
    tpu.vector_store %arg11[%c15, %c0_23], %39 {strides = array<i32>} : memref<16x8xf32, #tpu.memory_space<vmem>>, vector<1x8xf32>,
    %c0_24 = arith.constant 0 : index
    %c0_25 = arith.constant 0 : index
    %41 = vector.load %arg5[%c0_24, %c0_25] : memref<64x32xbf16, #tpu.memory_space<vmem>>, vector<64x32xbf16>
    %c0_26 = arith.constant 0 : index
    %c0_27 = arith.constant 0 : index
    %c0_28 = arith.constant 0 : index
    %42 = vector.load %arg2[%c0_26, %c0_27, %c0_28] : memref<1x512x32xbf16, #tpu.memory_space<vmem>>, vector<1x512x32xbf16>
    %43 = vector.shape_cast %42 : vector<1x512x32xbf16> to vector<512x32xbf16>
    %cst_29 = arith.constant dense<0.000000e+00> : vector<64x512xf32>
    %44 = tpu.matmul %41, %43, %cst_29 {dimension_numbers = #tpu.dot_dimension_numbers<[1], [1], [0], [0], [0, 0, 1, 0], [], []>} : vector<64x32xbf16>, vector<512x32xbf16>, vector<64x512xf32> -> vector<64x512xf32>
    %c0_30 = arith.constant 0 : index
    %c0_31 = arith.constant 0 : index
    %45 = vector.load %arg6[%c0_30, %c0_31] : memref<64x1xf32, #tpu.memory_space<vmem>>, vector<64x1xf32>
    %46 = vector.broadcast %45 : vector<64x1xf32> to vector<64x512xf32>
    %47 = arith.addf %44, %46 : vector<64x512xf32>
    %48 = arith.truncf %47 : vector<64x512xf32> to vector<64x512xbf16>
    %c0_32 = arith.constant 0 : index
    %c0_33 = arith.constant 0 : index
    %49 = vector.load %arg11[%c0_32, %c0_33] : memref<16x8xf32, #tpu.memory_space<vmem>>, vector<4x8xf32>
    %50 = arith.truncf %49 : vector<4x8xf32> to vector<4x8xbf16>
    %51 = vector.extract_strided_slice %48 {offsets = [0, 0], sizes = [8, 512], strides = [1, 1]} : vector<64x512xbf16> to vector<8x512xbf16>
    %52 = vector.extract_strided_slice %48 {offsets = [32, 0], sizes = [8, 512], strides = [1, 1]} : vector<64x512xbf16> to vector<8x512xbf16>
    %cst_34 = arith.constant dense<0.000000e+00> : vector<4x512xf32>
    %53 = tpu.matmul %50, %51, %cst_34 {dimension_numbers = #tpu.dot_dimension_numbers<[1], [0], [0], [1], [0, 0, 1, 1], [], []>} : vector<4x8xbf16>, vector<8x512xbf16>, vector<4x512xf32> -> vector<4x512xf32>
    %c0_35 = arith.constant 0 : index
    %c0_36 = arith.constant 0 : index
    %c0_37 = arith.constant 0 : index
    %c0_38 = arith.constant 0 : index
    %54 = vector.load %arg10[%c0_35, %c0_36, %c0_37, %c0_38] : memref<1x4x4x512xf32, #tpu.memory_space<vmem>>, vector<1x1x4x512xf32>
    %55 = vector.shape_cast %54 : vector<1x1x4x512xf32> to vector<4x512xf32>
    %56 = vector.shape_cast %53 : vector<4x512xf32> to vector<1x1x4x512xf32>
    tpu.vector_store %arg10[%c0_35, %c0_36, %c0_37, %c0_38], %56 {strides = array<i32>} : memref<1x4x4x512xf32, #tpu.memory_space<vmem>>, vector<1x1x4x512xf32>,
    %cst_39 = arith.constant dense<0xFF800000> : vector<4xf32>
    %57 = vector.multi_reduction <maximumf>, %53, %cst_39 [1] : vector<4x512xf32> to vector<4xf32>
    %58 = vector.shape_cast %57 : vector<4xf32> to vector<4x1xf32>
    %59 = vector.broadcast %58 : vector<4x1xf32> to vector<4x512xf32>
    %60 = arith.subf %53, %59 : vector<4x512xf32>
    %61 = math.exp %60 : vector<4x512xf32>
    %cst_40 = arith.constant dense<0.000000e+00> : vector<4xf32>
    %62 = vector.multi_reduction <add>, %61, %cst_40 [1] : vector<4x512xf32> to vector<4xf32>
    %63 = vector.shape_cast %62 : vector<4xf32> to vector<4x1xf32>
    %64 = vector.broadcast %63 : vector<4x1xf32> to vector<4x512xf32>
    %65 = arith.divf %61, %64 : vector<4x512xf32>
    %66 = arith.truncf %65 : vector<4x512xf32> to vector<4x512xbf16>
    %cst_41 = arith.constant dense<0.000000e+00> : vector<4x8xf32>
    %67 = tpu.matmul %66, %52, %cst_41 {dimension_numbers = #tpu.dot_dimension_numbers<[1], [1], [0], [0], [0, 0, 1, 0], [], []>} : vector<4x512xbf16>, vector<8x512xbf16>, vector<4x8xf32> -> vector<4x8xf32>
    %68 = vector.extract_strided_slice %67 {offsets = [0, 0], sizes = [1, 8], strides = [1, 1]} : vector<4x8xf32> to vector<1x8xf32>
    %c0_42 = arith.constant 0 : index
    %c0_43 = arith.constant 0 : index
    %69 = vector.load %arg12[%c0_42, %c0_43] : memref<4x32xf32, #tpu.memory_space<vmem>>, vector<1x8xf32>
    tpu.vector_store %arg12[%c0_42, %c0_43], %68 {strides = array<i32>} : memref<4x32xf32, #tpu.memory_space<vmem>>, vector<1x8xf32>,
    %70 = vector.extract_strided_slice %67 {offsets = [1, 0], sizes = [1, 8], strides = [1, 1]} : vector<4x8xf32> to vector<1x8xf32>
    %c0_44 = arith.constant 0 : index
    %c8_45 = arith.constant 8 : index
    %71 = vector.load %arg12[%c0_44, %c8_45] : memref<4x32xf32, #tpu.memory_space<vmem>>, vector<1x8xf32>
    tpu.vector_store %arg12[%c0_44, %c8_45], %70 {strides = array<i32>} : memref<4x32xf32, #tpu.memory_space<vmem>>, vector<1x8xf32>,
    %72 = vector.extract_strided_slice %67 {offsets = [2, 0], sizes = [1, 8], strides = [1, 1]} : vector<4x8xf32> to vector<1x8xf32>
    %c0_46 = arith.constant 0 : index
    %c16 = arith.constant 16 : index
    %73 = vector.load %arg12[%c0_46, %c16] : memref<4x32xf32, #tpu.memory_space<vmem>>, vector<1x8xf32>
    tpu.vector_store %arg12[%c0_46, %c16], %72 {strides = array<i32>} : memref<4x32xf32, #tpu.memory_space<vmem>>, vector<1x8xf32>,
    %74 = vector.extract_strided_slice %67 {offsets = [3, 0], sizes = [1, 8], strides = [1, 1]} : vector<4x8xf32> to vector<1x8xf32>
    %c0_47 = arith.constant 0 : index
    %c24 = arith.constant 24 : index
    %75 = vector.load %arg12[%c0_47, %c24] : memref<4x32xf32, #tpu.memory_space<vmem>>, vector<1x8xf32>
    tpu.vector_store %arg12[%c0_47, %c24], %74 {strides = array<i32>} : memref<4x32xf32, #tpu.memory_space<vmem>>, vector<1x8xf32>,
    %c4_48 = arith.constant 4 : index
    %c0_49 = arith.constant 0 : index
    %76 = vector.load %arg11[%c4_48, %c0_49] : memref<16x8xf32, #tpu.memory_space<vmem>>, vector<4x8xf32>
    %77 = arith.truncf %76 : vector<4x8xf32> to vector<4x8xbf16>
    %78 = vector.extract_strided_slice %48 {offsets = [8, 0], sizes = [8, 512], strides = [1, 1]} : vector<64x512xbf16> to vector<8x512xbf16>
    %79 = vector.extract_strided_slice %48 {offsets = [40, 0], sizes = [8, 512], strides = [1, 1]} : vector<64x512xbf16> to vector<8x512xbf16>
    %cst_50 = arith.constant dense<0.000000e+00> : vector<4x512xf32>
    %80 = tpu.matmul %77, %78, %cst_50 {dimension_numbers = #tpu.dot_dimension_numbers<[1], [0], [0], [1], [0, 0, 1, 1], [], []>} : vector<4x8xbf16>, vector<8x512xbf16>, vector<4x512xf32> -> vector<4x512xf32>
    %c0_51 = arith.constant 0 : index
    %c1_52 = arith.constant 1 : index
    %c0_53 = arith.constant 0 : index
    %c0_54 = arith.constant 0 : index
    %81 = vector.load %arg10[%c0_51, %c1_52, %c0_53, %c0_54] : memref<1x4x4x512xf32, #tpu.memory_space<vmem>>, vector<1x1x4x512xf32>
    %82 = vector.shape_cast %81 : vector<1x1x4x512xf32> to vector<4x512xf32>
    %83 = vector.shape_cast %80 : vector<4x512xf32> to vector<1x1x4x512xf32>
    tpu.vector_store %arg10[%c0_51, %c1_52, %c0_53, %c0_54], %83 {strides = array<i32>} : memref<1x4x4x512xf32, #tpu.memory_space<vmem>>, vector<1x1x4x512xf32>,
    %cst_55 = arith.constant dense<0xFF800000> : vector<4xf32>
    %84 = vector.multi_reduction <maximumf>, %80, %cst_55 [1] : vector<4x512xf32> to vector<4xf32>
    %85 = vector.shape_cast %84 : vector<4xf32> to vector<4x1xf32>
    %86 = vector.broadcast %85 : vector<4x1xf32> to vector<4x512xf32>
    %87 = arith.subf %80, %86 : vector<4x512xf32>
    %88 = math.exp %87 : vector<4x512xf32>
    %cst_56 = arith.constant dense<0.000000e+00> : vector<4xf32>
    %89 = vector.multi_reduction <add>, %88, %cst_56 [1] : vector<4x512xf32> to vector<4xf32>
    %90 = vector.shape_cast %89 : vector<4xf32> to vector<4x1xf32>
    %91 = vector.broadcast %90 : vector<4x1xf32> to vector<4x512xf32>
    %92 = arith.divf %88, %91 : vector<4x512xf32>
    %93 = arith.truncf %92 : vector<4x512xf32> to vector<4x512xbf16>
    %cst_57 = arith.constant dense<0.000000e+00> : vector<4x8xf32>
    %94 = tpu.matmul %93, %79, %cst_57 {dimension_numbers = #tpu.dot_dimension_numbers<[1], [1], [0], [0], [0, 0, 1, 0], [], []>} : vector<4x512xbf16>, vector<8x512xbf16>, vector<4x8xf32> -> vector<4x8xf32>
    %95 = vector.extract_strided_slice %94 {offsets = [0, 0], sizes = [1, 8], strides = [1, 1]} : vector<4x8xf32> to vector<1x8xf32>
    %c1_58 = arith.constant 1 : index
    %c0_59 = arith.constant 0 : index
    %96 = vector.load %arg12[%c1_58, %c0_59] : memref<4x32xf32, #tpu.memory_space<vmem>>, vector<1x8xf32>
    tpu.vector_store %arg12[%c1_58, %c0_59], %95 {strides = array<i32>} : memref<4x32xf32, #tpu.memory_space<vmem>>, vector<1x8xf32>,
    %97 = vector.extract_strided_slice %94 {offsets = [1, 0], sizes = [1, 8], strides = [1, 1]} : vector<4x8xf32> to vector<1x8xf32>
    %c1_60 = arith.constant 1 : index
    %c8_61 = arith.constant 8 : index
    %98 = vector.load %arg12[%c1_60, %c8_61] : memref<4x32xf32, #tpu.memory_space<vmem>>, vector<1x8xf32>
    tpu.vector_store %arg12[%c1_60, %c8_61], %97 {strides = array<i32>} : memref<4x32xf32, #tpu.memory_space<vmem>>, vector<1x8xf32>,
    %99 = vector.extract_strided_slice %94 {offsets = [2, 0], sizes = [1, 8], strides = [1, 1]} : vector<4x8xf32> to vector<1x8xf32>
    %c1_62 = arith.constant 1 : index
    %c16_63 = arith.constant 16 : index
    %100 = vector.load %arg12[%c1_62, %c16_63] : memref<4x32xf32, #tpu.memory_space<vmem>>, vector<1x8xf32>
    tpu.vector_store %arg12[%c1_62, %c16_63], %99 {strides = array<i32>} : memref<4x32xf32, #tpu.memory_space<vmem>>, vector<1x8xf32>,
    %101 = vector.extract_strided_slice %94 {offsets = [3, 0], sizes = [1, 8], strides = [1, 1]} : vector<4x8xf32> to vector<1x8xf32>
    %c1_64 = arith.constant 1 : index
    %c24_65 = arith.constant 24 : index
    %102 = vector.load %arg12[%c1_64, %c24_65] : memref<4x32xf32, #tpu.memory_space<vmem>>, vector<1x8xf32>
    tpu.vector_store %arg12[%c1_64, %c24_65], %101 {strides = array<i32>} : memref<4x32xf32, #tpu.memory_space<vmem>>, vector<1x8xf32>,
    %c8_66 = arith.constant 8 : index
    %c0_67 = arith.constant 0 : index
    %103 = vector.load %arg11[%c8_66, %c0_67] : memref<16x8xf32, #tpu.memory_space<vmem>>, vector<4x8xf32>
    %104 = arith.truncf %103 : vector<4x8xf32> to vector<4x8xbf16>
    %105 = vector.extract_strided_slice %48 {offsets = [16, 0], sizes = [8, 512], strides = [1, 1]} : vector<64x512xbf16> to vector<8x512xbf16>
    %106 = vector.extract_strided_slice %48 {offsets = [48, 0], sizes = [8, 512], strides = [1, 1]} : vector<64x512xbf16> to vector<8x512xbf16>
    %cst_68 = arith.constant dense<0.000000e+00> : vector<4x512xf32>
    %107 = tpu.matmul %104, %105, %cst_68 {dimension_numbers = #tpu.dot_dimension_numbers<[1], [0], [0], [1], [0, 0, 1, 1], [], []>} : vector<4x8xbf16>, vector<8x512xbf16>, vector<4x512xf32> -> vector<4x512xf32>
    %c0_69 = arith.constant 0 : index
    %c2_70 = arith.constant 2 : index
    %c0_71 = arith.constant 0 : index
    %c0_72 = arith.constant 0 : index
    %108 = vector.load %arg10[%c0_69, %c2_70, %c0_71, %c0_72] : memref<1x4x4x512xf32, #tpu.memory_space<vmem>>, vector<1x1x4x512xf32>
    %109 = vector.shape_cast %108 : vector<1x1x4x512xf32> to vector<4x512xf32>
    %110 = vector.shape_cast %107 : vector<4x512xf32> to vector<1x1x4x512xf32>
    tpu.vector_store %arg10[%c0_69, %c2_70, %c0_71, %c0_72], %110 {strides = array<i32>} : memref<1x4x4x512xf32, #tpu.memory_space<vmem>>, vector<1x1x4x512xf32>,
    %cst_73 = arith.constant dense<0xFF800000> : vector<4xf32>
    %111 = vector.multi_reduction <maximumf>, %107, %cst_73 [1] : vector<4x512xf32> to vector<4xf32>
    %112 = vector.shape_cast %111 : vector<4xf32> to vector<4x1xf32>
    %113 = vector.broadcast %112 : vector<4x1xf32> to vector<4x512xf32>
    %114 = arith.subf %107, %113 : vector<4x512xf32>
    %115 = math.exp %114 : vector<4x512xf32>
    %cst_74 = arith.constant dense<0.000000e+00> : vector<4xf32>
    %116 = vector.multi_reduction <add>, %115, %cst_74 [1] : vector<4x512xf32> to vector<4xf32>
    %117 = vector.shape_cast %116 : vector<4xf32> to vector<4x1xf32>
    %118 = vector.broadcast %117 : vector<4x1xf32> to vector<4x512xf32>
    %119 = arith.divf %115, %118 : vector<4x512xf32>
    %120 = arith.truncf %119 : vector<4x512xf32> to vector<4x512xbf16>
    %cst_75 = arith.constant dense<0.000000e+00> : vector<4x8xf32>
    %121 = tpu.matmul %120, %106, %cst_75 {dimension_numbers = #tpu.dot_dimension_numbers<[1], [1], [0], [0], [0, 0, 1, 0], [], []>} : vector<4x512xbf16>, vector<8x512xbf16>, vector<4x8xf32> -> vector<4x8xf32>
    %122 = vector.extract_strided_slice %121 {offsets = [0, 0], sizes = [1, 8], strides = [1, 1]} : vector<4x8xf32> to vector<1x8xf32>
    %c2_76 = arith.constant 2 : index
    %c0_77 = arith.constant 0 : index
    %123 = vector.load %arg12[%c2_76, %c0_77] : memref<4x32xf32, #tpu.memory_space<vmem>>, vector<1x8xf32>
    tpu.vector_store %arg12[%c2_76, %c0_77], %122 {strides = array<i32>} : memref<4x32xf32, #tpu.memory_space<vmem>>, vector<1x8xf32>,
    %124 = vector.extract_strided_slice %121 {offsets = [1, 0], sizes = [1, 8], strides = [1, 1]} : vector<4x8xf32> to vector<1x8xf32>
    %c2_78 = arith.constant 2 : index
    %c8_79 = arith.constant 8 : index
    %125 = vector.load %arg12[%c2_78, %c8_79] : memref<4x32xf32, #tpu.memory_space<vmem>>, vector<1x8xf32>
    tpu.vector_store %arg12[%c2_78, %c8_79], %124 {strides = array<i32>} : memref<4x32xf32, #tpu.memory_space<vmem>>, vector<1x8xf32>,
    %126 = vector.extract_strided_slice %121 {offsets = [2, 0], sizes = [1, 8], strides = [1, 1]} : vector<4x8xf32> to vector<1x8xf32>
    %c2_80 = arith.constant 2 : index
    %c16_81 = arith.constant 16 : index
    %127 = vector.load %arg12[%c2_80, %c16_81] : memref<4x32xf32, #tpu.memory_space<vmem>>, vector<1x8xf32>
    tpu.vector_store %arg12[%c2_80, %c16_81], %126 {strides = array<i32>} : memref<4x32xf32, #tpu.memory_space<vmem>>, vector<1x8xf32>,
    %128 = vector.extract_strided_slice %121 {offsets = [3, 0], sizes = [1, 8], strides = [1, 1]} : vector<4x8xf32> to vector<1x8xf32>
    %c2_82 = arith.constant 2 : index
    %c24_83 = arith.constant 24 : index
    %129 = vector.load %arg12[%c2_82, %c24_83] : memref<4x32xf32, #tpu.memory_space<vmem>>, vector<1x8xf32>
    tpu.vector_store %arg12[%c2_82, %c24_83], %128 {strides = array<i32>} : memref<4x32xf32, #tpu.memory_space<vmem>>, vector<1x8xf32>,
    %c12_84 = arith.constant 12 : index
    %c0_85 = arith.constant 0 : index
    %130 = vector.load %arg11[%c12_84, %c0_85] : memref<16x8xf32, #tpu.memory_space<vmem>>, vector<4x8xf32>
    %131 = arith.truncf %130 : vector<4x8xf32> to vector<4x8xbf16>
    %132 = vector.extract_strided_slice %48 {offsets = [24, 0], sizes = [8, 512], strides = [1, 1]} : vector<64x512xbf16> to vector<8x512xbf16>
    %133 = vector.extract_strided_slice %48 {offsets = [56, 0], sizes = [8, 512], strides = [1, 1]} : vector<64x512xbf16> to vector<8x512xbf16>
    %cst_86 = arith.constant dense<0.000000e+00> : vector<4x512xf32>
    %134 = tpu.matmul %131, %132, %cst_86 {dimension_numbers = #tpu.dot_dimension_numbers<[1], [0], [0], [1], [0, 0, 1, 1], [], []>} : vector<4x8xbf16>, vector<8x512xbf16>, vector<4x512xf32> -> vector<4x512xf32>
    %c0_87 = arith.constant 0 : index
    %c3_88 = arith.constant 3 : index
    %c0_89 = arith.constant 0 : index
    %c0_90 = arith.constant 0 : index
    %135 = vector.load %arg10[%c0_87, %c3_88, %c0_89, %c0_90] : memref<1x4x4x512xf32, #tpu.memory_space<vmem>>, vector<1x1x4x512xf32>
    %136 = vector.shape_cast %135 : vector<1x1x4x512xf32> to vector<4x512xf32>
    %137 = vector.shape_cast %134 : vector<4x512xf32> to vector<1x1x4x512xf32>
    tpu.vector_store %arg10[%c0_87, %c3_88, %c0_89, %c0_90], %137 {strides = array<i32>} : memref<1x4x4x512xf32, #tpu.memory_space<vmem>>, vector<1x1x4x512xf32>,
    %cst_91 = arith.constant dense<0xFF800000> : vector<4xf32>
    %138 = vector.multi_reduction <maximumf>, %134, %cst_91 [1] : vector<4x512xf32> to vector<4xf32>
    %139 = vector.shape_cast %138 : vector<4xf32> to vector<4x1xf32>
    %140 = vector.broadcast %139 : vector<4x1xf32> to vector<4x512xf32>
    %141 = arith.subf %134, %140 : vector<4x512xf32>
    %142 = math.exp %141 : vector<4x512xf32>
    %cst_92 = arith.constant dense<0.000000e+00> : vector<4xf32>
    %143 = vector.multi_reduction <add>, %142, %cst_92 [1] : vector<4x512xf32> to vector<4xf32>
    %144 = vector.shape_cast %143 : vector<4xf32> to vector<4x1xf32>
    %145 = vector.broadcast %144 : vector<4x1xf32> to vector<4x512xf32>
    %146 = arith.divf %142, %145 : vector<4x512xf32>
    %147 = arith.truncf %146 : vector<4x512xf32> to vector<4x512xbf16>
    %cst_93 = arith.constant dense<0.000000e+00> : vector<4x8xf32>
    %148 = tpu.matmul %147, %133, %cst_93 {dimension_numbers = #tpu.dot_dimension_numbers<[1], [1], [0], [0], [0, 0, 1, 0], [], []>} : vector<4x512xbf16>, vector<8x512xbf16>, vector<4x8xf32> -> vector<4x8xf32>
    %149 = vector.extract_strided_slice %148 {offsets = [0, 0], sizes = [1, 8], strides = [1, 1]} : vector<4x8xf32> to vector<1x8xf32>
    %c3_94 = arith.constant 3 : index
    %c0_95 = arith.constant 0 : index
    %150 = vector.load %arg12[%c3_94, %c0_95] : memref<4x32xf32, #tpu.memory_space<vmem>>, vector<1x8xf32>
    tpu.vector_store %arg12[%c3_94, %c0_95], %149 {strides = array<i32>} : memref<4x32xf32, #tpu.memory_space<vmem>>, vector<1x8xf32>,
    %151 = vector.extract_strided_slice %148 {offsets = [1, 0], sizes = [1, 8], strides = [1, 1]} : vector<4x8xf32> to vector<1x8xf32>
    %c3_96 = arith.constant 3 : index
    %c8_97 = arith.constant 8 : index
    %152 = vector.load %arg12[%c3_96, %c8_97] : memref<4x32xf32, #tpu.memory_space<vmem>>, vector<1x8xf32>
    tpu.vector_store %arg12[%c3_96, %c8_97], %151 {strides = array<i32>} : memref<4x32xf32, #tpu.memory_space<vmem>>, vector<1x8xf32>,
    %153 = vector.extract_strided_slice %148 {offsets = [2, 0], sizes = [1, 8], strides = [1, 1]} : vector<4x8xf32> to vector<1x8xf32>
    %c3_98 = arith.constant 3 : index
    %c16_99 = arith.constant 16 : index
    %154 = vector.load %arg12[%c3_98, %c16_99] : memref<4x32xf32, #tpu.memory_space<vmem>>, vector<1x8xf32>
    tpu.vector_store %arg12[%c3_98, %c16_99], %153 {strides = array<i32>} : memref<4x32xf32, #tpu.memory_space<vmem>>, vector<1x8xf32>,
    %155 = vector.extract_strided_slice %148 {offsets = [3, 0], sizes = [1, 8], strides = [1, 1]} : vector<4x8xf32> to vector<1x8xf32>
    %c3_100 = arith.constant 3 : index
    %c24_101 = arith.constant 24 : index
    %156 = vector.load %arg12[%c3_100, %c24_101] : memref<4x32xf32, #tpu.memory_space<vmem>>, vector<1x8xf32>
    tpu.vector_store %arg12[%c3_100, %c24_101], %155 {strides = array<i32>} : memref<4x32xf32, #tpu.memory_space<vmem>>, vector<1x8xf32>,
    %c0_102 = arith.constant 0 : index
    %c0_103 = arith.constant 0 : index
    %157 = vector.load %arg12[%c0_102, %c0_103] : memref<4x32xf32, #tpu.memory_space<vmem>>, vector<4x32xf32>
    %158 = arith.truncf %157 : vector<4x32xf32> to vector<4x32xbf16>
    %c0_104 = arith.constant 0 : index
    %c0_105 = arith.constant 0 : index
    %159 = vector.load %arg7[%c0_104, %c0_105] : memref<32x32xbf16, #tpu.memory_space<vmem>>, vector<32x32xbf16>
    %cst_106 = arith.constant dense<0.000000e+00> : vector<4x32xf32>
    %160 = tpu.matmul %158, %159, %cst_106 {dimension_numbers = #tpu.dot_dimension_numbers<[1], [1], [0], [0], [0, 0, 1, 0], [], []>} : vector<4x32xbf16>, vector<32x32xbf16>, vector<4x32xf32> -> vector<4x32xf32>
    %c0_107 = arith.constant 0 : index
    %c0_108 = arith.constant 0 : index
    %161 = vector.load %arg8[%c0_107, %c0_108] : memref<1x32xf32, #tpu.memory_space<vmem>>, vector<1x32xf32>
    %162 = vector.broadcast %161 : vector<1x32xf32> to vector<4x32xf32>
    %163 = arith.addf %160, %162 : vector<4x32xf32>
    %c0_109 = arith.constant 0 : index
    %c0_110 = arith.constant 0 : index
    %c0_111 = arith.constant 0 : index
    %164 = vector.load %arg9[%c0_109, %c0_110, %c0_111] : memref<1x4x32xf32, #tpu.memory_space<vmem>>, vector<1x4x32xf32>
    %165 = vector.shape_cast %164 : vector<1x4x32xf32> to vector<4x32xf32>
    %166 = vector.shape_cast %163 : vector<4x32xf32> to vector<1x4x32xf32>
    tpu.vector_store %arg9[%c0_109, %c0_110, %c0_111], %166 {strides = array<i32>} : memref<1x4x32xf32, #tpu.memory_space<vmem>>, vector<1x4x32xf32>,
    return
  }
  func.func @transform_0(%arg0: i32) -> (i32, i32, i32) {
    %c0_i32 = arith.constant 0 : i32
    %c0_i32_0 = arith.constant 0 : i32
    %c0_i32_1 = arith.constant 0 : i32
    return %arg0, %c0_i32, %c0_i32_0 : i32, i32, i32
  }
  func.func @transform_1(%arg0: i32) -> (i32, i32, i32) {
    %c0_i32 = arith.constant 0 : i32
    %c0_i32_0 = arith.constant 0 : i32
    %c0_i32_1 = arith.constant 0 : i32
    return %arg0, %c0_i32, %c0_i32_0 : i32, i32, i32
  }
  func.func @transform_2(%arg0: i32) -> (i32, i32) {
    %c0_i32 = arith.constant 0 : i32
    %c0_i32_0 = arith.constant 0 : i32
    %c0_i32_1 = arith.constant 0 : i32
    return %c0_i32, %c0_i32_0 : i32, i32
  }
  func.func @transform_3(%arg0: i32) -> (i32, i32) {
    %c0_i32 = arith.constant 0 : i32
    %c0_i32_0 = arith.constant 0 : i32
    %c0_i32_1 = arith.constant 0 : i32
    return %c0_i32, %c0_i32_0 : i32, i32
  }
  func.func @transform_4(%arg0: i32) -> (i32, i32) {
    %c0_i32 = arith.constant 0 : i32
    %c0_i32_0 = arith.constant 0 : i32
    %c0_i32_1 = arith.constant 0 : i32
    return %c0_i32, %c0_i32_0 : i32, i32
  }
  func.func @transform_5(%arg0: i32) -> (i32, i32) {
    %c0_i32 = arith.constant 0 : i32
    %c0_i32_0 = arith.constant 0 : i32
    %c0_i32_1 = arith.constant 0 : i32
    return %c0_i32, %c0_i32_0 : i32, i32
  }
  func.func @transform_6(%arg0: i32) -> (i32, i32) {
    %c0_i32 = arith.constant 0 : i32
    %c0_i32_0 = arith.constant 0 : i32
    %c0_i32_1 = arith.constant 0 : i32
    return %c0_i32, %c0_i32_0 : i32, i32
  }
  func.func @transform_7(%arg0: i32) -> (i32, i32) {
    %c0_i32 = arith.constant 0 : i32
    %c0_i32_0 = arith.constant 0 : i32
    %c0_i32_1 = arith.constant 0 : i32
    return %c0_i32, %c0_i32_0 : i32, i32
  }
  func.func @transform_8(%arg0: i32) -> (i32, i32, i32) {
    %c0_i32 = arith.constant 0 : i32
    %c0_i32_0 = arith.constant 0 : i32
    %c0_i32_1 = arith.constant 0 : i32
    return %arg0, %c0_i32, %c0_i32_0 : i32, i32, i32
  }
  func.func @transform_9(%arg0: i32) -> (i32, i32, i32, i32) {
    %c0_i32 = arith.constant 0 : i32
    %c0_i32_0 = arith.constant 0 : i32
    %c0_i32_1 = arith.constant 0 : i32
    %c0_i32_2 = arith.constant 0 : i32
    return %arg0, %c0_i32, %c0_i32_0, %c0_i32_1 : i32, i32, i32, i32
  }
}

</mosaic_0001>

<bundles_post_ra>
// kernel: query_attention_forward.1
= control target key start
LH: loop header
LB: loop body
LE: loop exit
PB: predicated region body
PF: predicated region fallthrough
CT: control target
= control target key end

     0   :  { %15 = vsyncpa [#allocation5], 0  ;;  %s3268_s0 = inlined_call_operand.vmem [shape: bf16[2,4,32], index: 0, kind: input, shape index: {}]   ;;  %s3269_s1 = inlined_call_operand.vmem [shape: bf16[2,512,32], index: 1, kind: input, shape index: {}]   ;;  %s3270_s2 = inlined_call_operand.vmem [shape: bf16[32,32], index: 2, kind: input, shape index: {}]   ;;  %s3271_s3 = inlined_call_operand.vmem [shape: f32[1,32], index: 3, kind: input, shape index: {}]   ;;  %s3272_s4 = inlined_call_operand.vmem [shape: bf16[64,32], index: 4, kind: input, shape index: {}]   ;;  %s3273_s5 = inlined_call_operand.vmem [shape: f32[64,1], index: 5, kind: input, shape index: {}]   ;;  %s3274_s6 = inlined_call_operand.vmem [shape: bf16[32,32], index: 6, kind: input, shape index: {}]   ;;  %s3275_s7 = inlined_call_operand.vmem [shape: f32[1,32], index: 7, kind: input, shape index: {}]   ;;  %s3276_s8 = inlined_call_operand.hbm [shape: f32[2,4,32], index: 8, kind: output, shape index: {0}]   ;;  %s3277_s9 = inlined_call_operand.vmem [shape: f32[2,4,4,512], index: 9, kind: output, shape index: {1}]  }
   0x1   :  { %17 = vsyncpa [#allocation5 + $0x1], 0  ;;  %s2689_s30 = smov 0   ;;  %s2691_s10 = smov 0  }
   0x2   :  { %s2693_s11 = smov 0   ;;  %s2695_s12 = smov 0  }
   0x3 LB: > { %s2710_s13 = sadd.s32 4294967295, %s2627_s12   ;;  %s2243_s14 = sadd.s32 4294967294, %s2627_s12   ;;  %s2627_s12 = sphi %s2695_s12, %s3283_s12   ;;  %s2623_s11 = sphi %s2693_s11, %s3282_s11   ;;  %s2619_s10 = sphi %s2691_s10, %s3281_s10   ;;  %s2615_s30 = sphi %s2689_s30, %s3280_s30  }
   0x4   : > { %s2714_s15 = sadd.s32 1, %s2627_s12   ;;  %s208_s16 = sadd.s32 1, %s2623_s11 }
   0x5   : > { %s205_s17 = ssub.s32 %s2627_s12, %s2714_s15  ;;  %p218_p0 = scmp.ne.s32.totalorder %s2623_s11, %s2619_s10 }
   0x6   : > { %p206_p1 = scmp.eq.s32.totalorder %s205_s17, 0  ;;  %p219_p2 = scmp.eq.s32.totalorder %s2710_s13, 1 }
   0x7   : > { %p224_p3 = scmp.ne.s32.totalorder %s2619_s10, %s2615_s30  ;;  %p225_p4 = scmp.eq.s32.totalorder %s2243_s14, 1 }
   0x8   : > { %s2725_s18 = scalar_select %p206_p1, %s2623_s11, %s208_s16  }
   0x9   : > { %p2727_p5 = por %p219_p2, %p218_p0  ;;  %p2731_p6 = por %p225_p4, %p224_p3 }
   0xa   : > { %p2246_p7 = scmp.ge.s32.totalorder %s2627_s12, 1  ;;  %p302_p8 = scmp.lt.s32.totalorder %s2627_s12, 3 }
   0xc   : > { %p303_p9 = pnand %p2246_p7, %p302_p8 }
   0xd   : > { %v2485_v0 = vld [vmem:[%s3270_s2] sm:$0xff] (!%p303_p9)   ;;  %v2629_v1 = vmov (!%p303_p9), 0.0   ;;  %vm384_vm0 = vcmask (!%p303_p9), 261120   ;;  %p347_p10 = scmp.lt.s32.totalorder (!%p303_p9), %s2710_s13, 1  ;;  %vm2630_vm1 = vmmov (!%p303_p9), 0   ;;  %v2486_v4 = vld [vmem:[%s3270_s2 + $0x8] sm:$0xff] (!%p303_p9)  }
   0xe   : > { %306 = sbr.rel (%p303_p9) target bundleno = 1587 (0x633), region = 52  ;;  %2387 = vmatprep.subr.bf16.mxu0 (!%p303_p9), %v2629_v1  ;;  %v389_v2 = vsel (!%p303_p9), %vm384_vm0, %v2485_v0, 0  ;;  %v2746_v3 = vld [vmem:[%s3272_s4] sm:$0xff] (!%p303_p9)   ;;  %2391 = vmatprep.mubr.msk.bf16.mxu0 (!%p303_p9), %vm2630_vm1, %v2629_v1  ;;  %v2631_v6 = vmov (!%p303_p9), 0   ;;  %v538_v7 = vld [vmem:[%s3273_s5 + $0x8] sm:$0xff] (!%p303_p9)  ;;  %v392_v8 = vsel (!%p303_p9), %vm384_vm0, %v2486_v4, 0 }
   0xf   : > { %2388 = vmatpush3.bf16.xpose.msra.mxu0 (!%p303_p9), %v389_v2  ;;  %2352 = vmatprep.mubr.msk.bf16.mxu1 (!%p303_p9), %vm384_vm0, %v2746_v3  ;;  %v537_v5 = vld [vmem:[%s3273_s5] sm:$0xff] (!%p303_p9)  ;;  %v2520_v58 = vld [vmem:[%s3272_s4 + $0x8] sm:$0xff] (!%p303_p9)   ;;  %v2521_v59 = vld [vmem:[%s3272_s4 + $0x10] sm:$0xff] (!%p303_p9)   ;;  %vm435_vm2 = vcmask (!%p303_p9), 57344   ;;  %vm450_vm3 = vcmask (!%p303_p9), 58369   ;;  %vm455_vm4 = vcmask (!%p303_p9), 59394  }
  0x10   : > { %2389 = vmatprep.subr.bf16.mxu0 (!%p303_p9), %v2629_v1  ;;  %2483 = vset.pattern.permute.xlu0 (!%p303_p9), %v2631_v6  ;;  %v2522_v60 = vld [vmem:[%s3272_s4 + $0x18] sm:$0xff] (!%p303_p9)   ;;  %v2253_v61 = vld [vmem:[%s3271_s3] ss:$0 sm:$0xff] (!%p303_p9)  ;;  %vm460_vm5 = vcmask (!%p303_p9), 60419   ;;  %s2632_s25 = smov (!%p303_p9), 104   ;;  %s2633_s26 = smov (!%p303_p9), 120  }
  0x11   : > { %2484 = vset.pattern.permute.xlu1 (!%p303_p9), %v2631_v6  ;;  %547 = vperm.xlu0 (!%p303_p9), %2483, %v537_v5   ;;  %v540_v5 = vld [vmem:[%s3273_s5 + $0x18] sm:$0xff] (!%p303_p9)  ;;  %vm1041_vm6 = vcmask (!%p303_p9), 1043456   ;;  %vm1037_vm7 = vcmask (!%p303_p9), 64512   ;;  %s2636_s22 = smov (!%p303_p9), 8   ;;  %vm1270_vm8 = vcmask (!%p303_p9), 123969   ;;  %vm1275_vm9 = vcmask (!%p303_p9), 190594  }
  0x12   : > { %vm1280_vm10 = vcmask (!%p303_p9), 257219   ;;  %s2328_s17 = sshll.u32 (!%p303_p9), %s2710_s13, 6  ;;  %vm2123_vm11 = vcmask (!%p303_p9), 257024  }
  0x15   : > { %s2755_s27 = scalar_select %p347_p10, %s2710_s13, 1  ;;  %552 = vperm.xlu0 %2483, %v538_v7   ;;  %v539_v7 = vld [vmem:[%s3273_s5 + $0x10] sm:$0xff] }
  0x17   : > { %s2331_s14 = sshll.u32 %s2755_s27, 8  ;;  %s2248_s24 = sshll.u32 %s2755_s27, 1  ;;  %2390 = vmatpush3.bf16.xpose.msra.mxu0 %v392_v8 }
  0x18   : > { %s2771_s23 = scalar_lea.vmem %s3269_s1, %s2331_s14  ;;  %s350_s28 = scalar_lea.vmem %s3268_s0, %s2248_s24 }
  0x19   : > { %v2487_v9 = vld [vmem:[%s2771_s23 + $0x40] sm:$0xff]   ;;  %v2491_v14 = vld [vmem:[%s2771_s23 + $0x48] sm:$0xff]   ;;  %v2495_v20 = vld [vmem:[%s2771_s23 + $0x50] sm:$0xff]   ;;  %s2634_s14 = smov 112   ;;  %s2332_s21 = sshll.u32 %s2755_s27, 6 }
  0x1a   : > { %2419 = vmatprep.subr.msk.bf16.mxu1 %vm384_vm0, %v2487_v9  ;;  %v2488_v10 = vld [vmem:[%s2771_s23] sm:$0xff]   ;;  %v2492_v15 = vld [vmem:[%s2771_s23 + $0x8] sm:$0xff]   ;;  %v2496_v22 = vld [vmem:[%s2771_s23 + $0x10] sm:$0xff]   ;;  %s2952_s24 = scalar_lea.vmem %s3277_s9, %s2332_s21  ;;  %s2635_s21 = smov 24  }
  0x1b   : > { %v2489_v11 = vld [vmem:[%s2771_s23 + $0xc0] sm:$0xff]   ;;  %v778_v12 = vsel %vm384_vm0, %v2488_v10, 0  ;;  %v2493_v18 = vld [vmem:[%s2771_s23 + $0xc8] sm:$0xff]   ;;  %v781_v19 = vsel %vm384_vm0, %v2492_v15, 0  ;;  %v2497_v24 = vld [vmem:[%s2771_s23 + $0xd0] sm:$0xff]   ;;  %v784_v25 = vsel %vm384_vm0, %v2496_v22, 0  ;;  %s3226_s27 = scalar_lea.hbm %s3276_s8, %s2328_s17 }
  0x1c   : > { %v2490_v13 = vld [vmem:[%s2771_s23 + $0x80] sm:$0xff]   ;;  %2337 = vmatpush3.bf16.xpose.msra.mxu1 %v778_v12  ;;  %2427 = vmatprep.subr.msk.bf16.mxu0 %vm384_vm0, %v2489_v11  ;;  %v2494_v21 = vld [vmem:[%s2771_s23 + $0x88] sm:$0xff]   ;;  %v2499_v26 = vld [vmem:[%s2771_s23 + $0x58] sm:$0xff]  }
  0x1d   : > { %v362_v16 = vld [vmem:[%s350_s28] sm:$0x3]  ;;  %2420 = vmatprep.subr.msk.bf16.mxu1 %vm384_vm0, %v2491_v14  ;;  %v826_v17 = vsel %vm384_vm0, %v2490_v13, 0  ;;  %v829_v23 = vsel %vm384_vm0, %v2494_v21, 0  ;;  %v2498_v27 = vld [vmem:[%s2771_s23 + $0x90] sm:$0xff]   ;;  %v2500_v28 = vld [vmem:[%s2771_s23 + $0x18] sm:$0xff]  }
  0x1e   : > { %2392 = vmatmul.mubr.msk.bf16.vlgmr.msra.gmra.mrb[0].mxu0 %vm384_vm0, %v362_v16  ;;  %v832_v29 = vsel %vm384_vm0, %v2498_v27, 0  ;;  %v2501_v30 = vld [vmem:[%s2771_s23 + $0xd8] sm:$0xff]   ;;  %v787_v31 = vsel %vm384_vm0, %v2500_v28, 0  ;;  %v2503_v32 = vld [vmem:[%s2771_s23 + $0x60] sm:$0xff]   ;;  %v2507_v38 = vld [vmem:[%s2771_s23 + $0x68] sm:$0xff]   ;;  %s337_s28 = sand.u32 1, %s2619_s10  }
  0x1f   : > { %2361 = vmatpush3.bf16.xpose.msra.mxu0 %v826_v17  ;;  %2376 = vmatprep.mubr.msk.bf16.mxu0 %vm384_vm0, %v2746_v3  ;;  %v2502_v33 = vld [vmem:[%s2771_s23 + $0x98] sm:$0xff]   ;;  %v2504_v34 = vld [vmem:[%s2771_s23 + $0x20] sm:$0xff]   ;;  %v2508_v40 = vld [vmem:[%s2771_s23 + $0x28] sm:$0xff]   ;;  %s2247_s29 = sshll.u32 %s337_s28, 2  ;;  %s2126_s13 = scalar_lea.sflag [#allocation5], %s337_s28 }
  0x20   : > { %2428 = vmatprep.subr.msk.bf16.mxu0 %vm384_vm0, %v2493_v18  ;;  %v835_v35 = vsel %vm384_vm0, %v2502_v33, 0  ;;  %v2505_v36 = vld [vmem:[%s2771_s23 + $0xe0] sm:$0xff]   ;;  %v790_v37 = vsel %vm384_vm0, %v2504_v34, 0  ;;  %v2509_v42 = vld [vmem:[%s2771_s23 + $0xe8] sm:$0xff]   ;;  %v793_v43 = vsel %vm384_vm0, %v2508_v40, 0  ;;  %v2511_v44 = vld [vmem:[%s2771_s23 + $0x70] sm:$0xff]  }
  0x21   : > { %v2506_v39 = vld [vmem:[%s2771_s23 + $0xa0] sm:$0xff]   ;;  %v2510_v45 = vld [vmem:[%s2771_s23 + $0xa8] sm:$0xff]   ;;  %v2512_v46 = vld [vmem:[%s2771_s23 + $0x30] sm:$0xff]  }
  0x22   : > { %v838_v41 = vsel %vm384_vm0, %v2506_v39, 0  ;;  %v841_v47 = vsel %vm384_vm0, %v2510_v45, 0  ;;  %v2513_v48 = vld [vmem:[%s2771_s23 + $0xf0] sm:$0xff]   ;;  %v796_v49 = vsel %vm384_vm0, %v2512_v46, 0  ;;  %v2515_v50 = vld [vmem:[%s2771_s23 + $0x78] sm:$0xff]  }
  0x23   : > { %v2514_v51 = vld [vmem:[%s2771_s23 + $0xb0] sm:$0xff]   ;;  %v2516_v52 = vld [vmem:[%s2771_s23 + $0x38] sm:$0xff]  }
  0x24   : > { %2339 = vmatpush3.bf16.xpose.msra.mxu1 %v781_v19  ;;  %v844_v53 = vsel %vm384_vm0, %v2514_v51, 0  ;;  %v2517_v54 = vld [vmem:[%s2771_s23 + $0xf8] sm:$0xff]   ;;  %v799_v55 = vsel %vm384_vm0, %v2516_v52, 0 }
  0x25   : > { %2421 = vmatprep.subr.msk.bf16.mxu1 %vm384_vm0, %v2495_v20  ;;  %v2518_v56 = vld [vmem:[%s2771_s23 + $0xb8] sm:$0xff]   ;;  %s2637_s23 = smov 16  }
  0x26   : > { %v847_v57 = vsel %vm384_vm0, %v2518_v56, 0 }
  0x27   : > { %2363 = vmatpush3.bf16.xpose.msra.mxu0 %v829_v23 }
  0x28   : > { %2429 = vmatprep.subr.msk.bf16.mxu0 %vm384_vm0, %v2497_v24 }
  0x2c   : > { %2341 = vmatpush3.bf16.xpose.msra.mxu1 %v784_v25 }
  0x2d   : > { %2422 = vmatprep.subr.msk.bf16.mxu1 %vm384_vm0, %v2499_v26 }
  0x2f   : > { %2365 = vmatpush3.bf16.xpose.msra.mxu0 %v832_v29 }
  0x30   : > { %2430 = vmatprep.subr.msk.bf16.mxu0 %vm384_vm0, %v2501_v30 }
  0x34   : > { %2343 = vmatpush3.bf16.xpose.msra.mxu1 %v787_v31 }
  0x35   : > { %2423 = vmatprep.subr.msk.bf16.mxu1 %vm384_vm0, %v2503_v32 }
  0x37   : > { %2367 = vmatpush3.bf16.xpose.msra.mxu0 %v835_v35 }
  0x38   : > { %2431 = vmatprep.subr.msk.bf16.mxu0 %vm384_vm0, %v2505_v36 }
  0x3c   : > { %2345 = vmatpush3.bf16.xpose.msra.mxu1 %v790_v37 }
  0x3d   : > { %2424 = vmatprep.subr.msk.bf16.mxu1 %vm384_vm0, %v2507_v38 }
  0x3f   : > { %2369 = vmatpush3.bf16.xpose.msra.mxu0 %v838_v41 }
  0x40   : > { %2432 = vmatprep.subr.msk.bf16.mxu0 %vm384_vm0, %v2509_v42 }
  0x44   : > { %2347 = vmatpush3.bf16.xpose.msra.mxu1 %v793_v43 }
  0x45   : > { %2425 = vmatprep.subr.msk.bf16.mxu1 %vm384_vm0, %v2511_v44 }
  0x47   : > { %2371 = vmatpush3.bf16.xpose.msra.mxu0 %v841_v47 }
  0x48   : > { %2433 = vmatprep.subr.msk.bf16.mxu0 %vm384_vm0, %v2513_v48 }
  0x4c   : > { %2349 = vmatpush3.bf16.xpose.msra.mxu1 %v796_v49 }
  0x4d   : > { %2426 = vmatprep.subr.msk.bf16.mxu1 %vm384_vm0, %v2515_v50 }
  0x4f   : > { %2373 = vmatpush3.bf16.xpose.msra.mxu0 %v844_v53 }
  0x50   : > { %2434 = vmatprep.subr.msk.bf16.mxu0 %vm384_vm0, %v2517_v54 }
  0x54   : > { %2351 = vmatpush3.bf16.xpose.msra.mxu1 %v799_v55 }
  0x57   : > { %2375 = vmatpush3.bf16.xpose.msra.mxu0 %v847_v57 }
  0x5b   : > { %2353 = vmatmul.mubr.msk.bf16.vlgmr.msra.gmra.mrb[0].mxu1 %vm384_vm0, %v2746_v3 }
  0x5c   : > { %2354 = vmatprep.mubr.msk.bf16.mxu1 %vm384_vm0, %v2520_v58 }
  0x5e   : > { %2377 = vmatmul.mubr.msk.bf16.vlgmr.msra.gmra.mrb[4].mxu0 %vm384_vm0, %v2746_v3 }
  0x5f   : > { %2378 = vmatprep.mubr.msk.bf16.mxu0 %vm384_vm0, %v2520_v58 }
  0x63   : > { %2355 = vmatmul.mubr.msk.bf16.gmra.mrb[4].mxu1 %vm384_vm0, %v2520_v58 }
  0x64   : > { %2356 = vmatprep.mubr.msk.bf16.mxu1 %vm384_vm0, %v2521_v59 }
  0x66   : > { %2379 = vmatmul.mubr.msk.bf16.gmra.mrb[8].mxu0 %vm384_vm0, %v2520_v58 }
  0x67   : > { %2380 = vmatprep.mubr.msk.bf16.mxu0 %vm384_vm0, %v2521_v59 }
  0x6b   : > { %2357 = vmatmul.mubr.msk.bf16.gmra.mrb[8].mxu1 %vm384_vm0, %v2521_v59 }
  0x6c   : > { %2358 = vmatprep.mubr.msk.bf16.mxu1 %vm384_vm0, %v2522_v60 }
  0x6e   : > { %2381 = vmatmul.mubr.msk.bf16.gmra.mrb[12].mxu0 %vm384_vm0, %v2521_v59 }
  0x6f   : > { %2382 = vmatprep.mubr.msk.bf16.mxu0 %vm384_vm0, %v2522_v60 }
  0x73   : > { %2359 = vmatmul.mubr.msk.bf16.gmra.mrb[12].mxu1 %vm384_vm0, %v2522_v60 }
  0x74   : > { %1086 = vmatprep.mubr.bf16.mxu1 %v2631_v6 }
  0x76   : > { %2383 = vmatmul.mubr.msk.bf16.gmra.mrb[16].mxu0 %vm384_vm0, %v2522_v60 }
  0x90   : > { %v548_v8 = vpop.permute.xlu0 %547 }
  0x94   : > { %v553_v10 = vpop.permute.xlu0 %552 }
  0xf1   : > { %v428_v62 = vpop.f32.mrb[0].mxu0 }
  0xf2   : > { %v429_v63 = vadd.f32 %v2253_v61, %v428_v62  ;;  %v2393_v0 = vpop.f32.mrb[1].mxu0 }
  0xf3   : > { %v431_v2 = vpop.f32.mrb[2].mxu0 }
  0xf4   : > { %v434_v3 = vmul.f32 0.35355338, %v429_v63  ;;  %v2394_v4 = vpop.f32.mrb[3].mxu0 }
  0xf6   : > { %446 = vrot.lane.b32.xlu0 %v434_v3, %s2632_s25  ;;  %438 = vrot.lane.b32.xlu1 %v434_v3, %s2633_s26  ;;  %436 = vst.msk [vmem:[#allocation2] sm:$0x1] %vm435_vm2, %v434_v3  ;;  %s2638_s26 = smov [#allocation4]  }
  0xf7   : > { %451 = vst.msk [vmem:[#allocation2 + $0x3] sm:$0x2] %vm450_vm3, %v434_v3 }
  0xf8   : > { %456 = vst.msk [vmem:[#allocation2 + $0x6] sm:$0x4] %vm455_vm4, %v434_v3 }
  0xf9   : > { %461 = vst.msk [vmem:[#allocation2 + $0x9] sm:$0x8] %vm460_vm5, %v434_v3 }
  0xfa   : > { %562 = vperm.xlu0 %2483, %v540_v5   ;;  %442 = vrot.lane.b32.xlu1 %v434_v3, %s2634_s14 }
  0xfe   : > { %557 = vperm.xlu1 %2484, %v539_v7  }
 0x12e   : > { %v907_v9 = vpop.f32.mrb[0].mxu1 }
 0x12f   : > { %v908_v11 = vadd.f32 %v907_v9, %v548_v8  ;;  %v909_v12 = vpop.f32.mrb[1].mxu1 }
 0x130   : > { %v910_v13 = vadd.f32 %v909_v12, %v548_v8  ;;  %v911_v14 = vpop.f32.mrb[2].mxu1 }
 0x131   : > { %v912_v15 = vadd.f32 %v911_v14, %v553_v10  ;;  %v913_v16 = vpop.f32.mrb[3].mxu1  ;;  %v980_v19 = vpop.f32.mrb[4].mxu0 }
 0x132   : > { %v914_v17 = vadd.f32 %v913_v16, %v553_v10  ;;  %v981_v21 = vadd.f32 %v980_v19, %v548_v8  ;;  %v982_v22 = vpop.f32.mrb[5].mxu0 }
 0x133   : > { %v1019_v18 = vpack.c.bf16 %v912_v15, %v908_v11  ;;  %v983_v24 = vadd.f32 %v982_v22, %v548_v8  ;;  %v984_v25 = vpop.f32.mrb[6].mxu0 }
 0x134   : > { %v1020_v20 = vpack.c.bf16 %v914_v17, %v910_v13  ;;  %v985_v27 = vadd.f32 %v984_v25, %v553_v10  ;;  %v986_v28 = vpop.f32.mrb[7].mxu0 }
 0x135   : > { %v1043_v23 = vsel %vm1041_vm6, %v1019_v18, 0  ;;  %v987_v30 = vadd.f32 %v986_v28, %v553_v10  ;;  %v1288_v47 = vrot.slane %v1019_v18, 4 }
 0x136   : > { %2301 = vmatprep.subr.msk.bf16.mxu1 %vm1041_vm6, %v1020_v20  ;;  %v917_v26 = vpop.f32.mrb[4].mxu1  ;;  %v1021_v32 = vpack.c.bf16 %v985_v27, %v981_v21  ;;  %v1289_v44 = vrot.slane %v1020_v20, 4 }
 0x137   : > { %1055 = vmatpush1.bf16.msra.mxu1 %v1043_v23  ;;  %v919_v29 = vpop.f32.mrb[5].mxu1  ;;  %v1022_v34 = vpack.c.bf16 %v987_v30, %v983_v24  ;;  %v1296_v58 = vsel %vm1041_vm6, %v1288_v47, 0 }
 0x138   : > { %v921_v31 = vpop.f32.mrb[6].mxu1  ;;  %v1049_v45 = vsel %vm1041_vm6, %v1021_v32, 0  ;;  %v1290_v0 = vrot.slane %v1021_v32, 4 }
 0x139   : > { %v923_v33 = vpop.f32.mrb[7].mxu1  ;;  %2303 = vmatprep.subr.msk.bf16.mxu1 %vm1041_vm6, %v1022_v34  ;;  %v990_v35 = vpop.f32.mrb[8].mxu0  ;;  %v1291_v56 = vrot.slane %v1022_v34, 4 }
 0x13a   : > { %v992_v36 = vpop.f32.mrb[9].mxu0  ;;  %v1302_v3 = vsel %vm1041_vm6, %v1290_v0, 0 }
 0x13b   : > { %v994_v37 = vpop.f32.mrb[10].mxu0 }
 0x13c   : > { %v996_v38 = vpop.f32.mrb[11].mxu0 }
 0x13e   : > { %v2913_v5 = vpop.f32.mrb[8].mxu1 }
 0x13f   : > { %v2916_v7 = vpop.f32.mrb[9].mxu1 }
 0x140   : > { %v2919_v8 = vpop.f32.mrb[10].mxu1 }
 0x141   : > { %v2921_v10 = vpop.f32.mrb[11].mxu1 }
 0x146   : > { %v2938_v21 = vpop.f32.mrb[12].mxu1 }
 0x147   : > { %v2940_v22 = vpop.f32.mrb[13].mxu1 }
 0x148   : > { %v2942_v23 = vpop.f32.mrb[14].mxu1 }
 0x149   : > { %v2944_v24 = vpop.f32.mrb[15].mxu1 }
 0x168   : > { %v447_v39 = vpop.permute.xlu0 %446  ;;  %v439_v40 = vpop.permute.xlu1 %438 }
 0x169   : > { %449 = vst.msk [vmem:[#allocation2 + $0x3] sm:$0x1] %vm435_vm2, %v447_v39  ;;  %441 = vst.msk [vmem:[#allocation2 + $0x1] sm:$0x1] %vm435_vm2, %v439_v40 }
 0x16a   : > { %454 = vst.msk [vmem:[#allocation2 + $0x6] sm:$0x2] %vm450_vm3, %v447_v39  ;;  %452 = vst.msk [vmem:[#allocation2 + $0x4] sm:$0x2] %vm450_vm3, %v439_v40 }
 0x16b   : > { %459 = vst.msk [vmem:[#allocation2 + $0x9] sm:$0x4] %vm455_vm4, %v447_v39  ;;  %457 = vst.msk [vmem:[#allocation2 + $0x7] sm:$0x4] %vm455_vm4, %v439_v40 }
 0x16c   : > { %464 = vst.msk [vmem:[#allocation2 + $0xc] sm:$0x8] %vm460_vm5, %v447_v39  ;;  %462 = vst.msk [vmem:[#allocation2 + $0xa] sm:$0x8] %vm460_vm5, %v439_v40  ;;  %v443_v41 = vpop.permute.xlu1 %442 }
 0x16d   : > { %445 = vst.msk [vmem:[#allocation2 + $0x2] sm:$0x1] %vm435_vm2, %v443_v41 }
 0x16e   : > { %453 = vst.msk [vmem:[#allocation2 + $0x5] sm:$0x2] %vm450_vm3, %v443_v41 }
 0x16f   : > { %458 = vst.msk [vmem:[#allocation2 + $0x8] sm:$0x4] %vm455_vm4, %v443_v41 }
 0x170   : > { %463 = vst.msk [vmem:[#allocation2 + $0xb] sm:$0x8] %vm460_vm5, %v443_v41 }
 0x174   : > { %v1035_v42 = vld [vmem:[#allocation2] sm:$0xf] }
 0x175   : > { %v1036_v43 = vpack.c.bf16 %v1035_v42, %v1035_v42  ;;  %v1282_v63 = vld [vmem:[#allocation2 + $0x4] sm:$0xf] }
 0x176   : > { %v1283_v2 = vpack.c.bf16 %v1282_v63, %v1282_v63  ;;  %v1545_v9 = vld [vmem:[#allocation2 + $0x8] sm:$0xf] }
 0x177   : > { %2302 = vmatmul.mubr.msk.bf16.vlgmr.msra.gmra.mrb[16].mxu1 %vm1037_vm7, %v1036_v43  ;;  %v1546_v11 = vpack.c.bf16 %v1545_v9, %v1545_v9  ;;  %v1788_v17 = vld [vmem:[#allocation2 + $0xc] sm:$0xf] }
 0x178   : > { %1096 = vmatpush1.bf16.msra.mxu1 %v1049_v45  ;;  %1127 = vmatprep.mubr.bf16.mxu1 %v2631_v6  ;;  %v1789_v19 = vpack.c.bf16 %v1788_v17, %v1788_v17 }
 0x179   : > { %2305 = vmatprep.subr.msk.bf16.mxu1 %vm1041_vm6, %v1289_v44  ;;  %v563_v46 = vpop.permute.xlu0 %562 }
 0x17a   : > { %v922_v48 = vadd.f32 %v921_v31, %v563_v46  ;;  %v924_v49 = vadd.f32 %v923_v33, %v563_v46  ;;  %v997_v50 = vadd.f32 %v996_v38, %v563_v46  ;;  %v995_v57 = vadd.f32 %v994_v37, %v563_v46 }
 0x17d   : > { %v558_v51 = vpop.permute.xlu1 %557 }
 0x17e   : > { %v918_v52 = vadd.f32 %v917_v26, %v558_v51  ;;  %v920_v53 = vadd.f32 %v919_v29, %v558_v51  ;;  %v991_v54 = vadd.f32 %v990_v35, %v558_v51  ;;  %v993_v55 = vadd.f32 %v992_v36, %v558_v51 }
 0x17f   : > { %2304 = vmatmul.mubr.msk.bf16.vlgmr.msra.gmra.mrb[20].mxu1 %vm1037_vm7, %v1036_v43 }
 0x180   : > { %1308 = vmatpush1.bf16.msra.mxu1 %v1296_v58  ;;  %1339 = vmatprep.mubr.bf16.mxu1 %v2631_v6  ;;  %v1024_v59 = vpack.c.bf16 %v924_v49, %v920_v53  ;;  %v1023_v60 = vpack.c.bf16 %v922_v48, %v918_v52  ;;  %v1026_v61 = vpack.c.bf16 %v997_v50, %v993_v55 }
 0x181   : > { %2307 = vmatprep.subr.msk.bf16.mxu1 %vm1041_vm6, %v1291_v56  ;;  %v1025_v62 = vpack.c.bf16 %v995_v57, %v991_v54 }
 0x182   : > { %v1551_v4 = vsel %vm1041_vm6, %v1023_v60, 0  ;;  %v1795_v13 = vrot.slane %v1024_v59, 4  ;;  %v1794_v14 = vrot.slane %v1023_v60, 4  ;;  %v1797_v16 = vrot.slane %v1026_v61, 4 }
 0x183   : > { %v1557_v12 = vsel %vm1041_vm6, %v1025_v62, 0  ;;  %v1796_v18 = vrot.slane %v1025_v62, 4 }
 0x184   : > { %v1802_v15 = vsel %vm1041_vm6, %v1794_v14, 0 }
 0x185   : > { %v1808_v20 = vsel %vm1041_vm6, %v1796_v18, 0 }
 0x187   : > { %2306 = vmatmul.mubr.msk.bf16.vlgmr.msra.gmra.mrb[24].mxu1 %vm1037_vm7, %v1283_v2 }
 0x188   : > { %1349 = vmatpush1.bf16.msra.mxu1 %v1302_v3  ;;  %1380 = vmatprep.mubr.bf16.mxu1 %v2631_v6 }
 0x189   : > { %2311 = vmatprep.subr.msk.bf16.mxu1 %vm1041_vm6, %v1024_v59 }
 0x18f   : > { %2308 = vmatmul.mubr.msk.bf16.vlgmr.msra.gmra.mrb[28].mxu1 %vm1037_vm7, %v1283_v2 }
 0x190   : > { %1563 = vmatpush1.bf16.msra.mxu1 %v1551_v4  ;;  %1594 = vmatprep.mubr.bf16.mxu1 %v2631_v6 }
 0x191   : > { %2313 = vmatprep.subr.msk.bf16.mxu1 %vm1041_vm6, %v1026_v61 }
 0x197   : > { %2312 = vmatmul.mubr.msk.bf16.vlgmr.msra.gmra.mrb[32].mxu1 %vm1037_vm7, %v1546_v11 }
 0x198   : > { %1604 = vmatpush1.bf16.msra.mxu1 %v1557_v12  ;;  %1635 = vmatprep.mubr.bf16.mxu1 %v2631_v6 }
 0x199   : > { %2317 = vmatprep.subr.msk.bf16.mxu1 %vm1041_vm6, %v1795_v13 }
 0x19f   : > { %2314 = vmatmul.mubr.msk.bf16.vlgmr.msra.gmra.mrb[36].mxu1 %vm1037_vm7, %v1546_v11 }
 0x1a0   : > { %1814 = vmatpush1.bf16.msra.mxu1 %v1802_v15  ;;  %1845 = vmatprep.mubr.bf16.mxu1 %v2631_v6 }
 0x1a1   : > { %2319 = vmatprep.subr.msk.bf16.mxu1 %vm1041_vm6, %v1797_v16 }
 0x1a7   : > { %2318 = vmatmul.mubr.msk.bf16.vlgmr.msra.gmra.mrb[40].mxu1 %vm1037_vm7, %v1789_v19 }
 0x1a8   : > { %1855 = vmatpush1.bf16.msra.mxu1 %v1808_v20  ;;  %1886 = vmatprep.mubr.bf16.mxu1 %v2631_v6 }
 0x1a9   : > { %2395 = vmatprep.subr.bf16.mxu1 %v2629_v1 }
 0x1af   : > { %2320 = vmatmul.mubr.msk.bf16.vlgmr.msra.gmra.mrb[44].mxu1 %vm1037_vm7, %v1789_v19 }
 0x1b0   : > { %2399 = vmatprep.mubr.msk.bf16.mxu1 %vm2630_vm1, %v2629_v1 }
 0x24a   : > { %v2947_v25 = vpop.f32.mrb[16].mxu1 }
 0x24b   : > { %v1146_v6 = vsel %vm1041_vm6, %v2947_v25, -inf  ;;  %v2956_v26 = vpop.f32.mrb[17].mxu1 }
 0x24c   : > { %v1140_v27 = vcombine.low %v2947_v25, %v2956_v26  ;;  %v1147_v28 = vsel %vm1041_vm6, %v2956_v26, -inf  ;;  %v1092_v29 = vpop.f32.mrb[18].mxu1 }
 0x24d   : > { %v1093_v30 = vpop.f32.mrb[19].mxu1  ;;  %v1150_v31 = vmax.f32 %v1146_v6, %v1147_v28 }
 0x24e   : > { %1144 = vst [vmem:[%s2952_s24] sm:$0xff] %v1140_v27 }
 0x252   : > { %v2963_v32 = vpop.f32.mrb[20].mxu1 }
 0x253   : > { %v1148_v33 = vsel %vm1041_vm6, %v2963_v32, -inf  ;;  %v2967_v34 = vpop.f32.mrb[21].mxu1 }
 0x254   : > { %v1141_v35 = vcombine.low %v2963_v32, %v2967_v34  ;;  %v1149_v36 = vsel %vm1041_vm6, %v2967_v34, -inf  ;;  %v1133_v37 = vpop.f32.mrb[22].mxu1 }
 0x255   : > { %v1134_v38 = vpop.f32.mrb[23].mxu1  ;;  %v1151_v39 = vmax.f32 %v1148_v33, %v1149_v36 }
 0x256   : > { %1145 = vst [vmem:[%s2952_s24 + $0x8] sm:$0xff] %v1141_v35 }
 0x257   : > { %v1152_v40 = vmax.f32 %v1150_v31, %v1151_v39 }
 0x259   : > { %1153 = vmax.xlane.f32.xlu1 %v1152_v40 }
 0x25a   : > { %v2974_v41 = vpop.f32.mrb[24].mxu1 }
 0x25b   : > { %v1400_v42 = vsel %vm1041_vm6, %v2974_v41, -inf  ;;  %v2978_v43 = vpop.f32.mrb[25].mxu1 }
 0x25c   : > { %v1393_v44 = vcombine.low %v2974_v41, %v2978_v43  ;;  %v1401_v45 = vsel %vm1041_vm6, %v2978_v43, -inf  ;;  %v1345_v46 = vpop.f32.mrb[26].mxu1 }
 0x25d   : > { %v1346_v47 = vpop.f32.mrb[27].mxu1  ;;  %v1404_v48 = vmax.f32 %v1400_v42, %v1401_v45  ;;  %v541_v42 = vld [vmem:[%s3273_s5 + $0x20] sm:$0xff] }
 0x25e   : > { %2309 = vst [vmem:[%s2952_s24 + $0x10] sm:$0xff] %v1393_v44  ;;  %v3043_v44 = vpop.f32.mrb[12].mxu0 }
 0x25f   : > { %v3045_v45 = vpop.f32.mrb[13].mxu0 }
 0x262   : > { %v2985_v49 = vpop.f32.mrb[28].mxu1 }
 0x263   : > { %v1402_v50 = vsel %vm1041_vm6, %v2985_v49, -inf  ;;  %v2989_v51 = vpop.f32.mrb[29].mxu1 }
 0x264   : > { %v1394_v52 = vcombine.low %v2985_v49, %v2989_v51  ;;  %v1403_v53 = vsel %vm1041_vm6, %v2989_v51, -inf  ;;  %v1386_v54 = vpop.f32.mrb[30].mxu1 }
 0x265   : > { %v1387_v55 = vpop.f32.mrb[31].mxu1  ;;  %v1405_v56 = vmax.f32 %v1402_v50, %v1403_v53 }
 0x266   : > { %2310 = vst [vmem:[%s2952_s24 + $0x18] sm:$0xff] %v1394_v52 }
 0x267   : > { %v1406_v57 = vmax.f32 %v1404_v48, %v1405_v56 }
 0x269   : > { %1407 = vmax.xlane.f32.xlu0 %v1406_v57 }
 0x26a   : > { %v2996_v58 = vpop.f32.mrb[32].mxu1 }
 0x26b   : > { %v1655_v59 = vsel %vm1041_vm6, %v2996_v58, -inf  ;;  %v3000_v60 = vpop.f32.mrb[33].mxu1 }
 0x26c   : > { %v1648_v61 = vcombine.low %v2996_v58, %v3000_v60  ;;  %v1656_v62 = vsel %vm1041_vm6, %v3000_v60, -inf  ;;  %v1600_v63 = vpop.f32.mrb[34].mxu1 }
 0x26d   : > { %v1601_v0 = vpop.f32.mrb[35].mxu1  ;;  %v1659_v2 = vmax.f32 %v1655_v59, %v1656_v62 }
 0x26e   : > { %2315 = vst [vmem:[%s2952_s24 + $0x20] sm:$0xff] %v1648_v61 }
 0x272   : > { %v3007_v3 = vpop.f32.mrb[36].mxu1 }
 0x273   : > { %v1657_v4 = vsel %vm1041_vm6, %v3007_v3, -inf  ;;  %v3011_v9 = vpop.f32.mrb[37].mxu1 }
 0x274   : > { %v1649_v11 = vcombine.low %v3007_v3, %v3011_v9  ;;  %v1658_v12 = vsel %vm1041_vm6, %v3011_v9, -inf  ;;  %v1641_v13 = vpop.f32.mrb[38].mxu1 }
 0x275   : > { %v1642_v14 = vpop.f32.mrb[39].mxu1  ;;  %v1660_v15 = vmax.f32 %v1657_v4, %v1658_v12 }
 0x276   : > { %2316 = vst [vmem:[%s2952_s24 + $0x28] sm:$0xff] %v1649_v11 }
 0x277   : > { %v1661_v16 = vmax.f32 %v1659_v2, %v1660_v15 }
 0x279   : > { %1662 = vmax.xlane.f32.xlu0 %v1661_v16 }
 0x27a   : > { %v3018_v17 = vpop.f32.mrb[40].mxu1 }
 0x27b   : > { %v1906_v18 = vsel %vm1041_vm6, %v3018_v17, -inf  ;;  %v3022_v19 = vpop.f32.mrb[41].mxu1 }
 0x27c   : > { %v1899_v20 = vcombine.low %v3018_v17, %v3022_v19  ;;  %v1907_v6 = vsel %vm1041_vm6, %v3022_v19, -inf  ;;  %v1851_v27 = vpop.f32.mrb[42].mxu1 }
 0x27d   : > { %v1852_v28 = vpop.f32.mrb[43].mxu1  ;;  %v1910_v29 = vmax.f32 %v1906_v18, %v1907_v6 }
 0x27e   : > { %2321 = vst [vmem:[%s2952_s24 + $0x30] sm:$0xff] %v1899_v20 }
 0x282   : > { %v3029_v30 = vpop.f32.mrb[44].mxu1 }
 0x283   : > { %v1908_v31 = vsel %vm1041_vm6, %v3029_v30, -inf  ;;  %v3033_v33 = vpop.f32.mrb[45].mxu1 }
 0x284   : > { %v1900_v35 = vcombine.low %v3029_v30, %v3033_v33  ;;  %v1909_v36 = vsel %vm1041_vm6, %v3033_v33, -inf  ;;  %v1892_v37 = vpop.f32.mrb[46].mxu1 }
 0x285   : > { %v1893_v38 = vpop.f32.mrb[47].mxu1  ;;  %v1911_v39 = vmax.f32 %v1908_v31, %v1909_v36  ;;  %v3087_v37 = vpop.f32.mrb[14].mxu0 }
 0x286   : > { %2322 = vst [vmem:[%s2952_s24 + $0x38] sm:$0xff] %v1900_v35 }
 0x287   : > { %v1912_v40 = vmax.f32 %v1910_v29, %v1911_v39  ;;  %v3089_v39 = vpop.f32.mrb[15].mxu0 }
 0x289   : > { %1913 = vmax.xlane.f32.xlu1 %v1912_v40 }
 0x29a   : > { %567 = vperm.xlu1 %2484, %v541_v42  }
 0x2e6   : > { %v1154_v46 = vpop.xlane.xlu1 %1153 }
 0x2e7   : > { %v1155_v47 = vsub.f32 %v2947_v25, %v1154_v46  ;;  %v1156_v48 = vsub.f32 %v2956_v26, %v1154_v46  ;;  %v1157_v50 = vsub.f32 %v2963_v32, %v1154_v46  ;;  %v1158_v52 = vsub.f32 %v2967_v34, %v1154_v46  ;;  %v542_v46 = vld [vmem:[%s3273_s5 + $0x28] sm:$0xff] }
 0x2e9   : > { %v1159_v53 = vmul.f32 1.442695, %v1155_v47  ;;  %v1161_v54 = vmul.f32 1.442695, %v1156_v48  ;;  %v1163_v55 = vmul.f32 1.442695, %v1157_v50 }
 0x2ea   : > { %v1165_v56 = vmul.f32 1.442695, %v1158_v52 }
 0x2eb   : > { %2525 = vpow2.f32 %v1159_v53 }
 0x2ec   : > { %2527 = vpow2.f32 %v1161_v54  ;;  %v3101_v54 = vpop.f32.mrb[16].mxu0 }
 0x2ed   : > { %2529 = vpow2.f32 %v1163_v55  ;;  %v3103_v55 = vpop.f32.mrb[17].mxu0 }
 0x2ee   : > { %2531 = vpow2.f32 %v1165_v56 }
 0x2f5   : > { %v3051_v57 = vpop.eup %2525 }
 0x2f6   : > { %v3053_v59 = vpop.eup %2527  ;;  %v1408_v61 = vpop.xlane.xlu0 %1407  ;;  %v1167_v25 = vsel %vm1041_vm6, %v3051_v57, 0.0 }
 0x2f7   : > { %v3057_v26 = vpop.eup %2529  ;;  %v1409_v32 = vsub.f32 %v2974_v41, %v1408_v61  ;;  %v1410_v34 = vsub.f32 %v2978_v43, %v1408_v61  ;;  %v1411_v62 = vsub.f32 %v2985_v49, %v1408_v61  ;;  %v1412_v63 = vsub.f32 %v2989_v51, %v1408_v61 }
 0x2f8   : > { %v1168_v0 = vsel %vm1041_vm6, %v3053_v59, 0.0  ;;  %v3065_v2 = vpop.eup %2531  ;;  %v1170_v14 = vsel %vm1041_vm6, %v3057_v26, 0.0 }
 0x2f9   : > { %v1413_v4 = vmul.f32 1.442695, %v1409_v32  ;;  %v1415_v11 = vmul.f32 1.442695, %v1410_v34  ;;  %v1417_v12 = vmul.f32 1.442695, %v1411_v62  ;;  %v1169_v13 = vadd.f32 %v1168_v0, %v1167_v25 }
 0x2fa   : > { %v1419_v41 = vmul.f32 1.442695, %v1412_v63  ;;  %v1172_v43 = vsel %vm1041_vm6, %v3065_v2, 0.0 }
 0x2fb   : > { %2533 = vpow2.f32 %v1413_v4  ;;  %v1171_v15 = vadd.f32 %v1170_v14, %v1169_v13 }
 0x2fc   : > { %2535 = vpow2.f32 %v1415_v11 }
 0x2fd   : > { %2537 = vpow2.f32 %v1417_v12  ;;  %v1173_v49 = vadd.f32 %v1172_v43, %v1171_v15 }
 0x2fe   : > { %2539 = vpow2.f32 %v1419_v41 }
 0x2ff   : > { %1174 = vadd.xlane.f32.xlu0 %v1173_v49 }
 0x305   : > { %v3071_v51 = vpop.eup %2533 }
 0x306   : > { %v3073_v16 = vpop.eup %2535  ;;  %v1421_v18 = vsel %vm1041_vm6, %v3071_v51, 0.0  ;;  %v1663_v38 = vpop.xlane.xlu0 %1662 }
 0x307   : > { %v3077_v20 = vpop.eup %2537  ;;  %v1422_v6 = vsel %vm1041_vm6, %v3073_v16, 0.0  ;;  %v1664_v40 = vsub.f32 %v2996_v58, %v1663_v38  ;;  %v1665_v42 = vsub.f32 %v3000_v60, %v1663_v38  ;;  %v1666_v50 = vsub.f32 %v3007_v3, %v1663_v38  ;;  %v543_v58 = vld [vmem:[%s3273_s5 + $0x30] sm:$0xff] }
 0x308   : > { %v3081_v27 = vpop.eup %2539  ;;  %v1423_v28 = vadd.f32 %v1422_v6, %v1421_v18  ;;  %v1424_v29 = vsel %vm1041_vm6, %v3077_v20, 0.0  ;;  %v1667_v52 = vsub.f32 %v3011_v9, %v1663_v38 }
 0x309   : > { %v1426_v35 = vsel %vm1041_vm6, %v3081_v27, 0.0  ;;  %v1668_v47 = vmul.f32 1.442695, %v1664_v40  ;;  %v1670_v48 = vmul.f32 1.442695, %v1665_v42  ;;  %v3141_v40 = vpop.f32.mrb[18].mxu0 }
 0x30a   : > { %v1425_v31 = vadd.f32 %v1424_v29, %v1423_v28  ;;  %v1672_v53 = vmul.f32 1.442695, %v1666_v50  ;;  %v1674_v56 = vmul.f32 1.442695, %v1667_v52  ;;  %v3143_v42 = vpop.f32.mrb[19].mxu0 }
 0x30b   : > { %2541 = vpow2.f32 %v1668_v47 }
 0x30c   : > { %v1427_v36 = vadd.f32 %v1426_v35, %v1425_v31  ;;  %2543 = vpow2.f32 %v1670_v48 }
 0x30d   : > { %2545 = vpow2.f32 %v1672_v53 }
 0x30e   : > { %1428 = vadd.xlane.f32.xlu1 %v1427_v36  ;;  %2547 = vpow2.f32 %v1674_v56 }
 0x315   : > { %572 = vperm.xlu0 %2483, %v542_v46   ;;  %v3107_v25 = vpop.eup %2541  ;;  %v544_v46 = vld [vmem:[%s3273_s5 + $0x38] sm:$0xff] }
 0x316   : > { %v1914_v60 = vpop.xlane.xlu1 %1913  ;;  %v3109_v9 = vpop.eup %2543  ;;  %v1676_v62 = vsel %vm1041_vm6, %v3107_v25, 0.0 }
 0x317   : > { %v1915_v61 = vsub.f32 %v3018_v17, %v1914_v60  ;;  %v1916_v3 = vsub.f32 %v3022_v19, %v1914_v60  ;;  %v1677_v63 = vsel %vm1041_vm6, %v3109_v9, 0.0  ;;  %v1917_v0 = vsub.f32 %v3029_v30, %v1914_v60  ;;  %v3116_v4 = vpop.eup %2545 }
 0x318   : > { %v1678_v17 = vadd.f32 %v1677_v63, %v1676_v62  ;;  %v1918_v19 = vsub.f32 %v3033_v33, %v1914_v60  ;;  %v1679_v12 = vsel %vm1041_vm6, %v3116_v4, 0.0  ;;  %v3121_v13 = vpop.eup %2547 }
 0x319   : > { %v1919_v32 = vmul.f32 1.442695, %v1915_v61  ;;  %v1921_v34 = vmul.f32 1.442695, %v1916_v3  ;;  %v1923_v11 = vmul.f32 1.442695, %v1917_v0 }
 0x31a   : > { %v1680_v14 = vadd.f32 %v1679_v12, %v1678_v17  ;;  %v1925_v41 = vmul.f32 1.442695, %v1918_v19  ;;  %v1681_v15 = vsel %vm1041_vm6, %v3121_v13, 0.0  ;;  %v568_v48 = vpop.permute.xlu1 %567 }
 0x31b   : > { %2549 = vpow2.f32 %v1919_v32  ;;  %v928_v50 = vadd.f32 %v2913_v5, %v568_v48  ;;  %v930_v52 = vadd.f32 %v2916_v7, %v568_v48  ;;  %v1001_v53 = vadd.f32 %v3043_v44, %v568_v48 }
 0x31c   : > { %2551 = vpow2.f32 %v1921_v34  ;;  %v1682_v30 = vadd.f32 %v1681_v15, %v1680_v14 }
 0x31d   : > { %2553 = vpow2.f32 %v1923_v11 }
 0x31e   : > { %2555 = vpow2.f32 %v1925_v41 }
 0x31f   : > { %577 = vperm.xlu1 %2484, %v543_v58   ;;  %v1003_v58 = vadd.f32 %v3045_v45, %v568_v48 }
 0x325   : > { %v3125_v43 = vpop.eup %2549 }
 0x326   : > { %v3127_v49 = vpop.eup %2551  ;;  %v1927_v33 = vsel %vm1041_vm6, %v3125_v43, 0.0 }
 0x327   : > { %v1928_v18 = vsel %vm1041_vm6, %v3127_v49, 0.0  ;;  %v3133_v6 = vpop.eup %2553 }
 0x328   : > { %v1929_v28 = vadd.f32 %v1928_v18, %v1927_v33  ;;  %v1930_v29 = vsel %vm1041_vm6, %v3133_v6, 0.0  ;;  %v3137_v31 = vpop.eup %2555 }
 0x329   : > { %v1932_v36 = vsel %vm1041_vm6, %v3137_v31, 0.0 }
 0x32a   : > { %v1931_v35 = vadd.f32 %v1930_v29, %v1929_v28 }
 0x32c   : > { %v1933_v38 = vadd.f32 %v1932_v36, %v1931_v35 }
 0x334   : > { %1683 = vadd.xlane.f32.xlu0 %v1682_v30 }
 0x343   : > { %1934 = vadd.xlane.f32.xlu1 %v1933_v38 }
 0x34a   : > { %582 = vperm.xlu0 %2483, %v544_v46  }
 0x38c   : > { %v1175_v47 = vpop.xlane.xlu0 %1174 }
 0x38d   : > { %2557 = vrcp.f32 %v1175_v47 }
 0x394   : > { %v573_v60 = vpop.permute.xlu0 %572 }
 0x395   : > { %v932_v56 = vadd.f32 %v2919_v8, %v573_v60  ;;  %v934_v61 = vadd.f32 %v2921_v10, %v573_v60  ;;  %v1005_v3 = vadd.f32 %v3087_v37, %v573_v60  ;;  %v1007_v32 = vadd.f32 %v3089_v39, %v573_v60 }
 0x397   : > { %v2558_v34 = vpop.eup %2557  ;;  %v1028_v62 = vpack.c.bf16 %v934_v61, %v930_v52  ;;  %v1027_v63 = vpack.c.bf16 %v932_v56, %v928_v50  ;;  %v1030_v0 = vpack.c.bf16 %v1007_v32, %v1003_v58  ;;  %v1029_v5 = vpack.c.bf16 %v1005_v3, %v1001_v53 }
 0x398   : > { %v1178_v7 = vmul.f32 %v2558_v34, %v3053_v59  ;;  %v1177_v45 = vmul.f32 %v2558_v34, %v3051_v57  ;;  %v1180_v10 = vmul.f32 %v2558_v34, %v3065_v2  ;;  %v1179_v59 = vmul.f32 %v2558_v34, %v3057_v26 }
 0x399   : > { %1185 = vmatprep.subr.bf16.mxu0 %v1028_v62  ;;  %v1444_v17 = vrot.slane %v1028_v62, 4  ;;  %v1443_v14 = vrot.slane %v1027_v63, 4  ;;  %v1446_v41 = vrot.slane %v1030_v0, 4  ;;  %v1445_v33 = vrot.slane %v1029_v5, 4 }
 0x39a   : > { %1186 = vmatpush1.bf16.xpose.msra.mxu0 %v1027_v63  ;;  %v1182_v44 = vpack.c.bf16 %v1178_v7, %v1178_v7  ;;  %v1181_v37 = vpack.c.bf16 %v1177_v45, %v1177_v45  ;;  %v1184_v39 = vpack.c.bf16 %v1180_v10, %v1180_v10  ;;  %v1183_v12 = vpack.c.bf16 %v1179_v59, %v1179_v59  ;;  %v2523_v59 = vld [vmem:[%s3274_s6] sm:$0xff]  }
 0x39b   : > { %1225 = vmatprep.subr.bf16.mxu0 %v1030_v0  ;;  %v1429_v8 = vpop.xlane.xlu1 %1428 }
 0x39c   : > { %1217 = vmatprep.mubr.bf16.mxu0 %v1182_v44  ;;  %2559 = vrcp.f32 %v1429_v8 }
 0x39f   : > { %v578_v29 = vpop.permute.xlu1 %577 }
 0x3a0   : > { %v938_v35 = vadd.f32 %v2938_v21, %v578_v29  ;;  %v940_v36 = vadd.f32 %v2940_v22, %v578_v29 }
 0x3a1   : > { %1218 = vmatmul.mubr.bf16.vlgmr.msra.gmra.mrb[20].mxu0 %v1181_v37 }
 0x3a2   : > { %1226 = vmatpush1.bf16.xpose.msra.mxu0 %v1029_v5  ;;  %1257 = vmatprep.mubr.bf16.mxu0 %v1184_v39 }
 0x3a3   : > { %1451 = vmatprep.subr.bf16.mxu0 %v1444_v17 }
 0x3a6   : > { %v2560_v19 = vpop.eup %2559 }
 0x3a7   : > { %v1432_v11 = vmul.f32 %v2560_v19, %v3073_v16  ;;  %v1431_v2 = vmul.f32 %v2560_v19, %v3071_v51  ;;  %v1434_v15 = vmul.f32 %v2560_v19, %v3081_v27  ;;  %v1433_v26 = vmul.f32 %v2560_v19, %v3077_v20 }
 0x3a8   : > { %v1011_v51 = vadd.f32 %v3101_v54, %v578_v29  ;;  %v1013_v27 = vadd.f32 %v3103_v55, %v578_v29 }
 0x3a9   : > { %v1436_v57 = vpack.c.bf16 %v1432_v11, %v1432_v11  ;;  %v1435_v30 = vpack.c.bf16 %v1431_v2, %v1431_v2  ;;  %v1438_v18 = vpack.c.bf16 %v1434_v15, %v1434_v15  ;;  %v1437_v16 = vpack.c.bf16 %v1433_v26, %v1433_v26 }
 0x3aa   : > { %v2078_v11 = vsel %vm384_vm0, %v2523_v59, 0 }
 0x3ab   : > { %2396 = vmatpush3.bf16.xpose.msra.mxu1 %v2078_v11 }
 0x3ac   : > { %2397 = vmatprep.subr.bf16.mxu1 %v2629_v1 }
 0x3ad   : > { %1258 = vmatmul.mubr.bf16.vlgmr.msra.gmra.mrb[20].mxu0 %v1183_v12  ;;  %v2524_v12 = vld [vmem:[%s3274_s6 + $0x8] sm:$0xff]  }
 0x3ae   : > { %1452 = vmatpush1.bf16.xpose.msra.mxu0 %v1443_v14  ;;  %1483 = vmatprep.mubr.bf16.mxu0 %v1436_v57  ;;  %v2081_v14 = vsel %vm384_vm0, %v2524_v12, 0 }
 0x3af   : > { %1491 = vmatprep.subr.bf16.mxu0 %v1446_v41 }
 0x3b3   : > { %2398 = vmatpush3.bf16.xpose.msra.mxu1 %v2081_v14 }
 0x3b5   : > { %1484 = vmatmul.mubr.bf16.vlgmr.msra.gmra.mrb[24].mxu0 %v1435_v30 }
 0x3b6   : > { %1492 = vmatpush1.bf16.xpose.msra.mxu0 %v1445_v33  ;;  %1523 = vmatprep.mubr.bf16.mxu0 %v1438_v18 }
 0x3c1   : > { %v1684_v28 = vpop.xlane.xlu0 %1683  ;;  %1524 = vmatmul.mubr.bf16.vlgmr.msra.gmra.mrb[24].mxu0 %v1437_v16 }
 0x3c2   : > { %2561 = vrcp.f32 %v1684_v28 }
 0x3c9   : > { %v583_v38 = vpop.permute.xlu0 %582 }
 0x3ca   : > { %v942_v46 = vadd.f32 %v2942_v23, %v583_v38  ;;  %v944_v47 = vadd.f32 %v2944_v24, %v583_v38  ;;  %v1015_v20 = vadd.f32 %v3141_v40, %v583_v38  ;;  %v1017_v48 = vadd.f32 %v3143_v42, %v583_v38 }
 0x3cc   : > { %v2562_v50 = vpop.eup %2561  ;;  %v1032_v52 = vpack.c.bf16 %v944_v47, %v940_v36  ;;  %v1031_v53 = vpack.c.bf16 %v942_v46, %v938_v35  ;;  %v1034_v58 = vpack.c.bf16 %v1017_v48, %v1013_v27  ;;  %v1033_v21 = vpack.c.bf16 %v1015_v20, %v1011_v51  ;;  %v2323_v47 = vld [vmem:[%s3275_s7] ss:$0 sm:$0xff] }
 0x3cd   : > { %v1687_v22 = vmul.f32 %v2562_v50, %v3109_v9  ;;  %v1686_v55 = vmul.f32 %v2562_v50, %v3107_v25  ;;  %v1689_v24 = vmul.f32 %v2562_v50, %v3121_v13  ;;  %v1688_v9 = vmul.f32 %v2562_v50, %v3116_v4 }
 0x3ce   : > { %1694 = vmatprep.subr.bf16.mxu0 %v1032_v52  ;;  %v1950_v60 = vrot.slane %v1032_v52, 4  ;;  %v1949_v32 = vrot.slane %v1031_v53, 4  ;;  %v1952_v34 = vrot.slane %v1034_v58, 4  ;;  %v1951_v0 = vrot.slane %v1033_v21, 4 }
 0x3cf   : > { %1695 = vmatpush1.bf16.xpose.msra.mxu0 %v1031_v53  ;;  %v1691_v54 = vpack.c.bf16 %v1687_v22, %v1687_v22  ;;  %v1690_v40 = vpack.c.bf16 %v1686_v55, %v1686_v55  ;;  %v1693_v42 = vpack.c.bf16 %v1689_v24, %v1689_v24  ;;  %v1692_v3 = vpack.c.bf16 %v1688_v9, %v1688_v9 }
 0x3d0   : > { %1734 = vmatprep.subr.bf16.mxu0 %v1034_v58  ;;  %v1935_v23 = vpop.xlane.xlu1 %1934 }
 0x3d1   : > { %1726 = vmatprep.mubr.bf16.mxu0 %v1691_v54  ;;  %2563 = vrcp.f32 %v1935_v23 }
 0x3d6   : > { %1727 = vmatmul.mubr.bf16.vlgmr.msra.gmra.mrb[28].mxu0 %v1690_v40 }
 0x3d7   : > { %1735 = vmatpush1.bf16.xpose.msra.mxu0 %v1033_v21  ;;  %1766 = vmatprep.mubr.bf16.mxu0 %v1693_v42 }
 0x3d8   : > { %1957 = vmatprep.subr.bf16.mxu0 %v1950_v60 }
 0x3db   : > { %v2564_v56 = vpop.eup %2563 }
 0x3dc   : > { %v1938_v61 = vmul.f32 %v2564_v56, %v3127_v49  ;;  %v1937_v13 = vmul.f32 %v2564_v56, %v3125_v43  ;;  %v1940_v62 = vmul.f32 %v2564_v56, %v3137_v31  ;;  %v1939_v4 = vmul.f32 %v2564_v56, %v3133_v6 }
 0x3de   : > { %v1942_v25 = vpack.c.bf16 %v1938_v61, %v1938_v61  ;;  %v1941_v63 = vpack.c.bf16 %v1937_v13, %v1937_v13  ;;  %v1944_v5 = vpack.c.bf16 %v1940_v62, %v1940_v62  ;;  %v1943_v49 = vpack.c.bf16 %v1939_v4, %v1939_v4 }
 0x3e2   : > { %1767 = vmatmul.mubr.bf16.vlgmr.msra.gmra.mrb[28].mxu0 %v1692_v3 }
 0x3e3   : > { %1958 = vmatpush1.bf16.xpose.msra.mxu0 %v1949_v32  ;;  %1989 = vmatprep.mubr.bf16.mxu0 %v1942_v25 }
 0x3e4   : > { %1997 = vmatprep.subr.bf16.mxu0 %v1952_v34 }
 0x3ea   : > { %1990 = vmatmul.mubr.bf16.vlgmr.msra.gmra.mrb[32].mxu0 %v1941_v63 }
 0x3eb   : > { %1998 = vmatpush1.bf16.xpose.msra.mxu0 %v1951_v0  ;;  %2029 = vmatprep.mubr.bf16.mxu0 %v1944_v5 }
 0x3f6   : > { %2030 = vmatmul.mubr.bf16.vlgmr.msra.gmra.mrb[32].mxu0 %v1943_v49 }
 0x480   : > { %v1259_v7 = vpop.f32.mrb[20].mxu0 }
 0x481   : > { %1265 = vst.msk [vmem:[#allocation3] sm:$0x1] %vm435_vm2, %v1259_v7  ;;  %1277 = vrot.lane.b32.xlu1 %v1259_v7, %s2635_s21  ;;  %1267 = vrot.lane.b32.xlu0 %v1259_v7, %s2636_s22  ;;  %v1261_v43 = vpop.f32.mrb[21].mxu0 }
 0x482   : > { %v1262_v31 = vpop.f32.mrb[22].mxu0 }
 0x483   : > { %v1263_v44 = vpop.f32.mrb[23].mxu0 }
 0x485   : > { %1272 = vrot.lane.b32.xlu0 %v1259_v7, %s2637_s23 }
 0x494   : > { %v1525_v45 = vpop.f32.mrb[24].mxu0 }
 0x495   : > { %1531 = vst.msk [vmem:[#allocation3 + $0x1] sm:$0x1] %vm435_vm2, %v1525_v45  ;;  %1533 = vrot.lane.b32.xlu0 %v1525_v45, %s2636_s22  ;;  %v1527_v6 = vpop.f32.mrb[25].mxu0 }
 0x496   : > { %v1528_v8 = vpop.f32.mrb[26].mxu0 }
 0x497   : > { %v1529_v10 = vpop.f32.mrb[27].mxu0 }
 0x499   : > { %1537 = vrot.lane.b32.xlu0 %v1525_v45, %s2637_s23 }
 0x49d   : > { %1541 = vrot.lane.b32.xlu0 %v1525_v45, %s2635_s21 }
 0x4b5   : > { %v1768_v37 = vpop.f32.mrb[28].mxu0 }
 0x4b6   : > { %1774 = vst.msk [vmem:[#allocation3 + $0x2] sm:$0x1] %vm435_vm2, %v1768_v37  ;;  %1776 = vrot.lane.b32.xlu0 %v1768_v37, %s2636_s22  ;;  %v1770_v39 = vpop.f32.mrb[29].mxu0 }
 0x4b7   : > { %v1771_v17 = vpop.f32.mrb[30].mxu0 }
 0x4b8   : > { %v1772_v19 = vpop.f32.mrb[31].mxu0 }
 0x4ba   : > { %1780 = vrot.lane.b32.xlu0 %v1768_v37, %s2637_s23 }
 0x4be   : > { %1784 = vrot.lane.b32.xlu0 %v1768_v37, %s2635_s21 }
 0x4c9   : > { %v2031_v57 = vpop.f32.mrb[32].mxu0 }
 0x4ca   : > { %2037 = vst.msk [vmem:[#allocation3 + $0x3] sm:$0x1] %vm435_vm2, %v2031_v57  ;;  %2039 = vrot.lane.b32.xlu0 %v2031_v57, %s2636_s22  ;;  %v2033_v41 = vpop.f32.mrb[33].mxu0 }
 0x4cb   : > { %v2034_v2 = vpop.f32.mrb[34].mxu0 }
 0x4cc   : > { %v2035_v15 = vpop.f32.mrb[35].mxu0 }
 0x4ce   : > { %2043 = vrot.lane.b32.xlu0 %v2031_v57, %s2637_s23 }
 0x4d2   : > { %2047 = vrot.lane.b32.xlu0 %v2031_v57, %s2635_s21  ;;  %s339_s21 = scalar_lea.vmem [#allocation4], %s2247_s29  ;;  %s2569_s29 = sshll.u32 %s2638_s26, 4  ;;  %s2570_s29 = int_to_ptr.vmem [resolvable:$false] %s2569_s29 }
 0x4d3   : > { %s2144_s22 = sshll.u32 %s339_s21, 4  ;;  %s2571_s14 = scalar_lea.vmem %s2570_s29, 128  ;;  %s3228_s22 = int_to_ptr.vmem [resolvable:$true] %s2144_s22 }
 0x4d4   : > { %s2565_s25 = scalar_lea.vmem %s3228_s22, 64  ;;  %p2572_p0 = scmp.lt.s32.totalorder %s3228_s22, %s2570_s29 }
 0x4d5   : > { %p2566_p11 = scmp.ne.s32.totalorder %s3228_s22, %s2565_s25  ;;  %p2573_p1 = scmp.lt.s32.totalorder %s2571_s14, %s2565_s25 }
 0x4d7   : > { %p2567_p12 = pnand %p2566_p11, %p2727_p5  ;;  %p2574_p2 = por %p2573_p1, %p2572_p0 }
 0x4d9   : > { %p2568_p13 = pneg %p2567_p12 }
 0x4db   : > { %p2575_p3 = pnand %p2574_p2, %p2568_p13 }
 0x4f3   : > { %v1268_v1 = vpop.permute.xlu0 %1267  ;;  %v1278_v33 = vpop.permute.xlu1 %1277 }
 0x4f4   : > { %1271 = vst.msk [vmem:[#allocation3 - $0x1] sm:$0x2] %vm1270_vm8, %v1268_v1 }
 0x4f7   : > { %v1273_v30 = vpop.permute.xlu0 %1272 }
 0x4f8   : > { %1276 = vst.msk [vmem:[#allocation3 - $0x2] sm:$0x4] %vm1275_vm9, %v1273_v30 }
 0x4f9   : > { %1281 = vst.msk [vmem:[#allocation3 - $0x3] sm:$0x8] %vm1280_vm10, %v1278_v33 }
 0x507   : > { %v1534_v18 = vpop.permute.xlu0 %1533 }
 0x508   : > { %1536 = vst.msk [vmem:[#allocation3] sm:$0x2] %vm1270_vm8, %v1534_v18 }
 0x50b   : > { %v1538_v26 = vpop.permute.xlu0 %1537 }
 0x50c   : > { %1540 = vst.msk [vmem:[#allocation3 - $0x1] sm:$0x4] %vm1275_vm9, %v1538_v26 }
 0x50f   : > { %v1542_v16 = vpop.permute.xlu0 %1541 }
 0x510   : > { %1544 = vst.msk [vmem:[#allocation3 - $0x2] sm:$0x8] %vm1280_vm10, %v1542_v16 }
 0x528   : > { %v1777_v28 = vpop.permute.xlu0 %1776 }
 0x529   : > { %1779 = vst.msk [vmem:[#allocation3 + $0x1] sm:$0x2] %vm1270_vm8, %v1777_v28 }
 0x52c   : > { %v1781_v29 = vpop.permute.xlu0 %1780 }
 0x52d   : > { %1783 = vst.msk [vmem:[#allocation3] sm:$0x4] %vm1275_vm9, %v1781_v29 }
 0x530   : > { %v1785_v35 = vpop.permute.xlu0 %1784 }
 0x531   : > { %1787 = vst.msk [vmem:[#allocation3 - $0x1] sm:$0x8] %vm1280_vm10, %v1785_v35 }
 0x53c   : > { %v2040_v36 = vpop.permute.xlu0 %2039 }
 0x53d   : > { %2042 = vst.msk [vmem:[#allocation3 + $0x2] sm:$0x2] %vm1270_vm8, %v2040_v36 }
 0x540   : > { %v2044_v51 = vpop.permute.xlu0 %2043 }
 0x541   : > { %2046 = vst.msk [vmem:[#allocation3 + $0x1] sm:$0x4] %vm1275_vm9, %v2044_v51 }
 0x544   : > { %v2048_v27 = vpop.permute.xlu0 %2047 }
 0x545   : > { %2050 = vst.msk [vmem:[#allocation3] sm:$0x8] %vm1280_vm10, %v2048_v27 }
 0x54c   : > { %v2051_v38 = vld [vmem:[#allocation3] sm:$0xf] }
 0x54d   : > { %v2052_v46 = vpack.c.bf16 %v2051_v38, %v2051_v38 }
 0x54f   : > { %2400 = vmatmul.mubr.msk.bf16.vlgmr.msra.gmra.mrb[48].mxu1 %vm384_vm0, %v2052_v46 }
 0x622   : > { %v2117_v20 = vpop.f32.mrb[48].mxu1 }
 0x623   : > { %v2118_v48 = vadd.f32 %v2323_v47, %v2117_v20  ;;  %v2401_v50 = vpop.f32.mrb[49].mxu1 }
 0x624   : > { %v2120_v52 = vpop.f32.mrb[50].mxu1 }
 0x625   : > { %v2402_v53 = vpop.f32.mrb[51].mxu1  ;;  %2124 = vst.msk [vmem:[%s339_s21] sm:$0xf] %vm2123_vm11, %v2118_v48 }
 0x626   : > { %2578 = shalt.err (!%p2575_p3)
}
 0x627   : > { %s2579_s28 = scalar_lea.hbm %s3226_s27, 64  ;;  %s2583_s21 = scalar_lea.hbm %s3276_s8, 128 }
 0x628   : > { %p2580_p4 = scmp.ne.s32.totalorder %s3226_s27, %s2579_s28  ;;  %p2584_p9 = scmp.lt.u32.totalorder %s3226_s27, %s3276_s8 }
 0x629   : > { %p2585_p10 = scmp.lt.u32.totalorder %s2583_s21, %s2579_s28  ;;  %p2587_p12 = scmp.lt.u32.totalorder %s2579_s28, %s3226_s27 }
 0x62a   : > { %p2581_p7 = pnand %p2580_p4, %p2727_p5 }
 0x62b   : > { %p2586_p11 = por %p2585_p10, %p2584_p9 }
 0x62c   : > { %p2582_p8 = pneg %p2581_p7 }
 0x62d   : > { %p2588_p13 = por %p2587_p12, %p2586_p11 }
 0x62f   : > { %p2589_p0 = pnand %p2588_p13, %p2582_p8 }
 0x631   : > { %2592 = shalt.err (!%p2589_p0)
}
 0x632   : > { %2435 = dma.vmem_to_hbm [thread:$0]  (%p2727_p5), %s3228_s22, 64, %s3226_s27, %s2126_s13  }
 0x633 PF: > { %p2441_p1 = scmp.ge.s32.totalorder %s2627_s12, 2  ;;  %s2159_s25 = sand.u32 1, %s2615_s30  }
 0x634   : > { %s2160_s26 = scalar_lea.sflag [#allocation5], %s2159_s25 }
 0x635   : > { %p2438_p2 = pnand %p2441_p1, %p2731_p6 }
 0x637   : > { %2610 = dma.done.wait (!%p2438_p2), %s2160_s26, 64  }
 0x638   : > { %2612 = vsyncadd (!%p2438_p2), %s2160_s26, 4294967232  ;;  %p20_p3 = scmp.ge.s32.totalorder %s2714_s15, 4   ;;  %s3280_s30 = smov %s2619_s10 }
 0x639   : > { %s3281_s10 = smov %s2623_s11  ;;  %s3282_s11 = smov %s2725_s18 }
 0x63a   : > { %s3283_s12 = smov %s2714_s15  ;;  %22 = sbr.rel (!%p20_p3) target bundleno = 3 (0x3), region = 105 }
 0x641   :  { %2173 = vsyncpa [#allocation5], 1 }
 0x642   :  { %2175 = vsyncpa [#allocation5 + $0x1], 1 }

</bundles_post_ra>
